<compile_context>
chip_gen: v6e
topology: v6e:2x2x1
jax: 0.10.0
libtpu: 0.0.40
codegen_flags: <defaults>
</compile_context>

<pallas_src>
import functools
import math

import jax
import jax.numpy as jnp
import numpy as np
from jax.experimental import pallas as pl
from jax.experimental.pallas import tpu as pltpu

EXPANSION = 4          # Bottleneck.expansion
_LANE = 128            # TPU lane width / base tile granule


def _round_up(x, m):
    return (x + m - 1) // m * m


def _choose_tile(dim, desired):
    """dim is a multiple of 128; largest tile <= desired that divides dim."""
    t = min(desired, dim)
    while dim % t:
        t -= _LANE
    return t


def _logish(x):
    # logish(x) = x * log(1 + sigmoid(x)); sigmoid in (0,1) so log1p is safe.
    sig = 1.0 / (1.0 + jnp.exp(-x))
    return x * jnp.log1p(sig)


# --------------------------------------------------------------------------
# Pallas kernel: tiled bf16 matmul, f32 output-as-accumulator, fused epilogue
# (folded-BN bias + optional residual + logish)
# --------------------------------------------------------------------------
def _fused_matmul_kernel(a_ref, b_ref, bias_ref, *rest,
                         activation, has_residual):
    if has_residual:
        r_ref, o_ref = rest
    else:
        (o_ref,) = rest
        r_ref = None

    k = pl.program_id(2)

    @pl.when(k == 0)
    def _():
        o_ref[...] = jnp.zeros_like(o_ref)

    # bf16 x bf16 -> f32, accumulated directly into the resident output block.
    o_ref[...] += jnp.dot(a_ref[...], b_ref[...],
                          preferred_element_type=jnp.float32)

    @pl.when(k == pl.num_programs(2) - 1)
    def _():
        out = o_ref[...] + bias_ref[...]
        if has_residual:
            out = out + r_ref[...]
        if activation == "logish":
            out = _logish(out)
        o_ref[...] = out


def fused_matmul(segments, w_padded, bias_padded, n_out, residual=None,
                 activation=None, use_pallas=True):
    """act(([seg0 | seg1 | ...] @ W) + bias [+ residual]).

    `segments` is a list of (M, K_i) activation matrices; each is zero-padded
    along K to a lane multiple and concatenated, matching how `w_padded`
    (Kp_total, Np) bf16 was built at init.  bias_padded is (1, Np) f32.
    Returns f32 (M, n_out).
    """
    M = segments[0].shape[0]
    padded, k_total = [], 0
    for s in segments:
        K = s.shape[1]
        Kp = _round_up(K, _LANE)
        padded.append(jnp.pad(s, ((0, 0), (0, Kp - K))))
        k_total += Kp
    Kp_all, Np = w_padded.shape
    assert Kp_all == k_total, (Kp_all, k_total)

    a = padded[0] if len(padded) == 1 else jnp.concatenate(padded, axis=1)
    Mp = _round_up(M, _LANE)
    a_p = jnp.pad(a, ((0, Mp - M), (0, 0))).astype(jnp.bfloat16)

    has_residual = residual is not None
    r_p = None
    if has_residual:
        r_p = jnp.pad(residual.astype(jnp.float32),
                      ((0, Mp - M), (0, Np - n_out)))

    if not use_pallas:
        # Pure-JAX reference path (identical bf16 operands / f32 accumulation).
        out = jnp.dot(a_p, w_padded, preferred_element_type=jnp.float32)
        out = out + bias_padded
        if has_residual:
            out = out + r_p
        if activation == "logish":
            out = _logish(out)
        return out[:M, :n_out]

    tm = _choose_tile(Mp, 256)
    tn = _choose_tile(Np, 256)
    tk = _choose_tile(Kp_all, 512)

    inputs = [a_p, w_padded, bias_padded]
    in_specs = [
        pl.BlockSpec((tm, tk), lambda i, j, k: (i, k)),
        pl.BlockSpec((tk, tn), lambda i, j, k: (k, j)),
        pl.BlockSpec((1, tn), lambda i, j, k: (0, j)),
    ]
    if has_residual:
        inputs.append(r_p)
        in_specs.append(pl.BlockSpec((tm, tn), lambda i, j, k: (i, j)))

    kernel = functools.partial(_fused_matmul_kernel,
                               activation=activation,
                               has_residual=has_residual)

    out = pl.pallas_call(
        kernel,
        out_shape=jax.ShapeDtypeStruct((Mp, Np), jnp.float32),
        grid_spec=pltpu.PrefetchScalarGridSpec(
            num_scalar_prefetch=0,
            grid=(Mp // tm, Np // tn, Kp_all // tk),
            in_specs=in_specs,
            out_specs=pl.BlockSpec((tm, tn), lambda i, j, k: (i, j)),
        ),
        compiler_params=pltpu.CompilerParams(
            dimension_semantics=("parallel", "parallel", "arbitrary"),
            vmem_limit_bytes=32 * 1024 * 1024),
    )(*inputs)
    return out[:M, :n_out]


# --------------------------------------------------------------------------
# Conv glue (layout plumbing only; the matmul lives in the kernel above)
# --------------------------------------------------------------------------
def _im2col(x, kh, kw, stride, pad):
    # TODO(synk): fold the kh*kw taps into the K grid axis via the index_map
    # over the padded NHWC tensor instead of materializing the 9x im2col
    # matrix (3x3 layers are memory-bound at CIFAR sizes).
    n, h, w, c = x.shape
    if pad:
        x = jnp.pad(x, ((0, 0), (pad, pad), (pad, pad), (0, 0)))
    ho = (h + 2 * pad - kh) // stride + 1
    wo = (w + 2 * pad - kw) // stride + 1
    patches = [x[:, i:i + stride * ho:stride, j:j + stride * wo:stride, :]
               for i in range(kh) for j in range(kw)]
    cols = jnp.stack(patches, axis=3)            # (n, ho, wo, kh*kw, c)
    return cols.reshape(n * ho * wo, kh * kw * c), ho, wo


def conv_apply(x, w_padded, bias_padded, *, n_out, kh, kw, stride, pad,
               activation, extra_cols=None, residual=None, use_pallas=True):
    """x NHWC -> NHWC; conv + folded-BN + optional residual + activation.

    `extra_cols` lets extra (M, K_i) activation segments ride on the same
    matmul (used to fuse the projection shortcut into conv3).
    """
    n = x.shape[0]
    if kh == 1 and kw == 1:
        xs = x[:, ::stride, ::stride, :] if stride != 1 else x
        ho, wo = xs.shape[1], xs.shape[2]
        cols = xs.reshape(n * ho * wo, xs.shape[3])
    else:
        cols, ho, wo = _im2col(x, kh, kw, stride, pad)
    segments = [cols] + (list(extra_cols) if extra_cols else [])
    out = fused_matmul(segments, w_padded, bias_padded, n_out,
                       residual=residual, activation=activation,
                       use_pallas=use_pallas)
    return out.reshape(n, ho, wo, n_out)


# --------------------------------------------------------------------------
# Deterministic parameters: conv weight + eval-mode BN folded into (W, bias),
# pre-transposed to (kh*kw*Cin, Cout), BN-scaled, padded, bf16 — once at init.
# --------------------------------------------------------------------------
def _fold_conv_bn(key, cin, cout, k, eps=1e-5):
    kw_, kg, kb, km, kv = jax.random.split(key, 5)
    std = 1.0 / math.sqrt(cin * k * k)
    w = std * jax.random.normal(kw_, (cout, cin, k, k), jnp.float32)  # OIHW
    gamma = 1.0 + 0.1 * jax.random.normal(kg, (cout,), jnp.float32)
    beta = 0.1 * jax.random.normal(kb, (cout,), jnp.float32)
    mean = 0.1 * jax.random.normal(km, (cout,), jnp.float32)
    var = 1.0 + 0.5 * jax.random.uniform(kv, (cout,), jnp.float32)

    scale = gamma / jnp.sqrt(var + eps)
    bias = beta - mean * scale

    w_mat = jnp.transpose(w, (2, 3, 1, 0)).reshape(k * k * cin, cout)
    w_mat = w_mat * scale[None, :]               # (A@B)*s == A@(B*s)
    kp = _round_up(k * k * cin, _LANE)
    np_ = _round_up(cout, _LANE)
    w_pad = jnp.pad(w_mat, ((0, kp - k * k * cin),
                            (0, np_ - cout))).astype(jnp.bfloat16)
    b_pad = jnp.pad(bias.reshape(1, cout), ((0, 0), (0, np_ - cout)))
    return w_pad, b_pad.astype(jnp.float32)


def make_bottleneck_params(key, in_planes, planes, stride):
    k1, k2, k3, k4 = jax.random.split(key, 4)
    p = {}
    p["w1"], p["b1"] = _fold_conv_bn(k1, in_planes, planes, 1)
    p["w2"], p["b2"] = _fold_conv_bn(k2, planes, planes, 3)
    w3, b3 = _fold_conv_bn(k3, planes, EXPANSION * planes, 1)
    if stride != 1 or in_planes != EXPANSION * planes:
        # Projection shortcut: fuse its 1x1 conv + BN into the conv3 matmul by
        # stacking the (already lane-padded) weights along the K axis and
        # summing the folded biases:  out2@W3 + b3 + x@Wsc + bsc.
        wsc, bsc = _fold_conv_bn(k4, in_planes, EXPANSION * planes, 1)
        p["w3sc"] = jnp.concatenate([w3, wsc], axis=0)
        p["b3sc"] = b3 + bsc
    else:
        p["w3"], p["b3"] = w3, b3
    return p


# --------------------------------------------------------------------------
# Forward pass (mirrors Bottleneck_Logish.forward)
# --------------------------------------------------------------------------
def bottleneck_logish_forward(params, x_nchw, *, planes, stride,
                              use_pallas=True):
    x = jnp.transpose(x_nchw, (0, 2, 3, 1)).astype(jnp.float32)  # NCHW -> NHWC

    out = conv_apply(x, params["w1"], params["b1"], n_out=planes,
                     kh=1, kw=1, stride=1, pad=0, activation="logish",
                     use_pallas=use_pallas)
    out = conv_apply(out, params["w2"], params["b2"], n_out=planes,
                     kh=3, kw=3, stride=stride, pad=1, activation="logish",
                     use_pallas=use_pallas)

    if "w3sc" in params:
        # conv3 + bn3 + (1x1 conv + BN shortcut) + logish, all in ONE matmul
        # kernel: the shortcut input rides the K axis of the same accumulation.
        xs = x[:, ::stride, ::stride, :] if stride != 1 else x
        xs_cols = xs.reshape(-1, xs.shape[3])
        out = conv_apply(out, params["w3sc"], params["b3sc"],
                         n_out=EXPANSION * planes, kh=1, kw=1, stride=1, pad=0,
                         activation="logish", extra_cols=[xs_cols],
                         use_pallas=use_pallas)
    else:
        # Identity shortcut: residual add fused into the kernel epilogue.
        res = x.reshape(-1, EXPANSION * planes)
        out = conv_apply(out, params["w3"], params["b3"],
                         n_out=EXPANSION * planes, kh=1, kw=1, stride=1, pad=0,
                         activation="logish", residual=res,
                         use_pallas=use_pallas)

    return jnp.transpose(out, (0, 3, 1, 2))      # back to NCHW like torch


if __name__ == "__main__":
    IN_PLANES, PLANES, STRIDE = 32, 16, 2        # exercises the conv shortcut
    H = W = 16

    key = jax.random.PRNGKey(0)
    kp, kx = jax.random.split(key)
    params = make_bottleneck_params(kp, IN_PLANES, PLANES, STRIDE)
    x = jax.random.normal(kx, (2, IN_PLANES, H, W), jnp.float32)

    fwd = jax.jit(functools.partial(bottleneck_logish_forward,
                                    planes=PLANES, stride=STRIDE))
    y = jax.block_until_ready(fwd(params, x))

    # Pure-JAX reference with identical bf16 operands / f32 accumulation
    # (only the Pallas matmul is swapped for jnp.dot).
    ref_fwd = jax.jit(functools.partial(bottleneck_logish_forward,
                                        planes=PLANES, stride=STRIDE,
                                        use_pallas=False))
    y_ref = jax.block_until_ready(ref_fwd(params, x))

    assert y.shape == (2, EXPANSION * PLANES, H // STRIDE, W // STRIDE), y.shape
    assert bool(jnp.all(jnp.isfinite(y)))
    assert np.allclose(np.asarray(y), np.asarray(y_ref),
                       atol=5e-3, rtol=5e-3), \
        float(jnp.max(jnp.abs(y - y_ref)))
    print("KERNEL_OK")
</pallas_src>

<mosaic_0001>
module attributes {stable_mosaic.version = 11 : i64} {
  func.func @_fused_matmul_kernel(%arg0: i32, %arg1: i32, %arg2: i32, %arg3: memref<256x128xbf16, #tpu.memory_space<vmem>>, %arg4: memref<128x128xbf16, #tpu.memory_space<vmem>>, %arg5: memref<1x128xf32, #tpu.memory_space<vmem>>, %arg6: memref<256x128xf32, #tpu.memory_space<vmem>>) attributes {dimension_semantics = [#tpu.dimension_semantics<parallel>, #tpu.dimension_semantics<parallel>, #tpu.dimension_semantics<arbitrary>], iteration_bounds = array<i64: 2, 1, 1>, scalar_prefetch = 0 : i64, scratch_operands = 0 : i64, tpu.core_type = #tpu.core_type<tc>, window_params = [{transform_indices = @transform_0, window_bounds = array<i64: 256, 128>}, {transform_indices = @transform_1, window_bounds = array<i64: 128, 128>}, {transform_indices = @transform_2, window_bounds = array<i64: 1, 128>}, {transform_indices = @transform_3, window_bounds = array<i64: 256, 128>}]} {
    %c0_i32 = arith.constant 0 : i32
    %0 = arith.cmpi eq, %arg2, %c0_i32 : i32
    %1 = arith.extui %0 : i1 to i32
    %c0_i32_0 = arith.constant 0 : i32
    %2 = arith.cmpi ne, %1, %c0_i32_0 : i32
    scf.if %2 {
      %cst_10 = arith.constant 0.000000e+00 : f32
      %12 = vector.broadcast %cst_10 : f32 to vector<256x128xf32>
      %c0_11 = arith.constant 0 : index
      %c0_12 = arith.constant 0 : index
      %13 = vector.load %arg6[%c0_11, %c0_12] : memref<256x128xf32, #tpu.memory_space<vmem>>, vector<256x128xf32>
      tpu.vector_store %arg6[%c0_11, %c0_12], %12 {strides = array<i32>} : memref<256x128xf32, #tpu.memory_space<vmem>>, vector<256x128xf32>,
    } else {
    }
    %c0 = arith.constant 0 : index
    %c0_1 = arith.constant 0 : index
    %3 = vector.load %arg6[%c0, %c0_1] : memref<256x128xf32, #tpu.memory_space<vmem>>, vector<256x128xf32>
    %c0_2 = arith.constant 0 : index
    %c0_3 = arith.constant 0 : index
    %4 = vector.load %arg3[%c0_2, %c0_3] : memref<256x128xbf16, #tpu.memory_space<vmem>>, vector<256x128xbf16>
    %c0_4 = arith.constant 0 : index
    %c0_5 = arith.constant 0 : index
    %5 = vector.load %arg4[%c0_4, %c0_5] : memref<128x128xbf16, #tpu.memory_space<vmem>>, vector<128x128xbf16>
    %cst = arith.constant dense<0.000000e+00> : vector<256x128xf32>
    %6 = tpu.matmul %4, %5, %cst {dimension_numbers = #tpu.dot_dimension_numbers<[1], [0], [0], [1], [0, 0, 1, 1], [], []>} : vector<256x128xbf16>, vector<128x128xbf16>, vector<256x128xf32> -> vector<256x128xf32>
    %7 = arith.addf %3, %6 : vector<256x128xf32>
    %c0_6 = arith.constant 0 : index
    %c0_7 = arith.constant 0 : index
    %8 = vector.load %arg6[%c0_6, %c0_7] : memref<256x128xf32, #tpu.memory_space<vmem>>, vector<256x128xf32>
    tpu.vector_store %arg6[%c0_6, %c0_7], %7 {strides = array<i32>} : memref<256x128xf32, #tpu.memory_space<vmem>>, vector<256x128xf32>,
    %c0_i32_8 = arith.constant 0 : i32
    %9 = arith.cmpi eq, %arg2, %c0_i32_8 : i32
    %10 = arith.extui %9 : i1 to i32
    %c0_i32_9 = arith.constant 0 : i32
    %11 = arith.cmpi ne, %10, %c0_i32_9 : i32
    scf.if %11 {
      %c0_10 = arith.constant 0 : index
      %c0_11 = arith.constant 0 : index
      %12 = vector.load %arg6[%c0_10, %c0_11] : memref<256x128xf32, #tpu.memory_space<vmem>>, vector<256x128xf32>
      %c0_12 = arith.constant 0 : index
      %c0_13 = arith.constant 0 : index
      %13 = vector.load %arg5[%c0_12, %c0_13] : memref<1x128xf32, #tpu.memory_space<vmem>>, vector<1x128xf32>
      %14 = vector.broadcast %13 : vector<1x128xf32> to vector<256x128xf32>
      %15 = arith.addf %12, %14 : vector<256x128xf32>
      %cst_14 = arith.constant 0.000000e+00 : f32
      %16 = vector.broadcast %cst_14 : f32 to vector<256x128xf32>
      %17 = arith.subf %16, %15 : vector<256x128xf32>
      %18 = math.exp %17 : vector<256x128xf32>
      %cst_15 = arith.constant 1.000000e+00 : f32
      %19 = vector.broadcast %cst_15 : f32 to vector<256x128xf32>
      %20 = arith.addf %19, %18 : vector<256x128xf32>
      %cst_16 = arith.constant 1.000000e+00 : f32
      %21 = vector.broadcast %cst_16 : f32 to vector<256x128xf32>
      %22 = arith.divf %21, %20 : vector<256x128xf32>
      %23 = math.log1p %22 : vector<256x128xf32>
      %24 = arith.mulf %15, %23 : vector<256x128xf32>
      %c0_17 = arith.constant 0 : index
      %c0_18 = arith.constant 0 : index
      %25 = vector.load %arg6[%c0_17, %c0_18] : memref<256x128xf32, #tpu.memory_space<vmem>>, vector<256x128xf32>
      tpu.vector_store %arg6[%c0_17, %c0_18], %24 {strides = array<i32>} : memref<256x128xf32, #tpu.memory_space<vmem>>, vector<256x128xf32>,
    } else {
    }
    return
  }
  func.func @transform_0(%arg0: i32, %arg1: i32, %arg2: i32) -> (i32, i32) {
    %c0_i32 = arith.constant 0 : i32
    return %arg0, %arg2 : i32, i32
  }
  func.func @transform_1(%arg0: i32, %arg1: i32, %arg2: i32) -> (i32, i32) {
    %c0_i32 = arith.constant 0 : i32
    return %arg2, %arg1 : i32, i32
  }
  func.func @transform_2(%arg0: i32, %arg1: i32, %arg2: i32) -> (i32, i32) {
    %c0_i32 = arith.constant 0 : i32
    %c0_i32_0 = arith.constant 0 : i32
    return %c0_i32, %arg1 : i32, i32
  }
  func.func @transform_3(%arg0: i32, %arg1: i32, %arg2: i32) -> (i32, i32) {
    %c0_i32 = arith.constant 0 : i32
    return %arg0, %arg1 : i32, i32
  }
}

module attributes {stable_mosaic.version = 11 : i64} {
  func.func @_fused_matmul_kernel(%arg0: i32, %arg1: i32, %arg2: i32, %arg3: memref<128x256xbf16, #tpu.memory_space<vmem>>, %arg4: memref<256x128xbf16, #tpu.memory_space<vmem>>, %arg5: memref<1x128xf32, #tpu.memory_space<vmem>>, %arg6: memref<128x128xf32, #tpu.memory_space<vmem>>) attributes {dimension_semantics = [#tpu.dimension_semantics<parallel>, #tpu.dimension_semantics<parallel>, #tpu.dimension_semantics<arbitrary>], iteration_bounds = array<i64: 1, 1, 1>, scalar_prefetch = 0 : i64, scratch_operands = 0 : i64, tpu.core_type = #tpu.core_type<tc>, window_params = [{transform_indices = @transform_0, window_bounds = array<i64: 128, 256>}, {transform_indices = @transform_1, window_bounds = array<i64: 256, 128>}, {transform_indices = @transform_2, window_bounds = array<i64: 1, 128>}, {transform_indices = @transform_3, window_bounds = array<i64: 128, 128>}]} {
    %c0_i32 = arith.constant 0 : i32
    %0 = arith.cmpi eq, %arg2, %c0_i32 : i32
    %1 = arith.extui %0 : i1 to i32
    %c0_i32_0 = arith.constant 0 : i32
    %2 = arith.cmpi ne, %1, %c0_i32_0 : i32
    scf.if %2 {
      %cst_10 = arith.constant 0.000000e+00 : f32
      %12 = vector.broadcast %cst_10 : f32 to vector<128x128xf32>
      %c0_11 = arith.constant 0 : index
      %c0_12 = arith.constant 0 : index
      %13 = vector.load %arg6[%c0_11, %c0_12] : memref<128x128xf32, #tpu.memory_space<vmem>>, vector<128x128xf32>
      tpu.vector_store %arg6[%c0_11, %c0_12], %12 {strides = array<i32>} : memref<128x128xf32, #tpu.memory_space<vmem>>, vector<128x128xf32>,
    } else {
    }
    %c0 = arith.constant 0 : index
    %c0_1 = arith.constant 0 : index
    %3 = vector.load %arg6[%c0, %c0_1] : memref<128x128xf32, #tpu.memory_space<vmem>>, vector<128x128xf32>
    %c0_2 = arith.constant 0 : index
    %c0_3 = arith.constant 0 : index
    %4 = vector.load %arg3[%c0_2, %c0_3] : memref<128x256xbf16, #tpu.memory_space<vmem>>, vector<128x256xbf16>
    %c0_4 = arith.constant 0 : index
    %c0_5 = arith.constant 0 : index
    %5 = vector.load %arg4[%c0_4, %c0_5] : memref<256x128xbf16, #tpu.memory_space<vmem>>, vector<256x128xbf16>
    %cst = arith.constant dense<0.000000e+00> : vector<128x128xf32>
    %6 = tpu.matmul %4, %5, %cst {dimension_numbers = #tpu.dot_dimension_numbers<[1], [0], [0], [1], [0, 0, 1, 1], [], []>} : vector<128x256xbf16>, vector<256x128xbf16>, vector<128x128xf32> -> vector<128x128xf32>
    %7 = arith.addf %3, %6 : vector<128x128xf32>
    %c0_6 = arith.constant 0 : index
    %c0_7 = arith.constant 0 : index
    %8 = vector.load %arg6[%c0_6, %c0_7] : memref<128x128xf32, #tpu.memory_space<vmem>>, vector<128x128xf32>
    tpu.vector_store %arg6[%c0_6, %c0_7], %7 {strides = array<i32>} : memref<128x128xf32, #tpu.memory_space<vmem>>, vector<128x128xf32>,
    %c0_i32_8 = arith.constant 0 : i32
    %9 = arith.cmpi eq, %arg2, %c0_i32_8 : i32
    %10 = arith.extui %9 : i1 to i32
    %c0_i32_9 = arith.constant 0 : i32
    %11 = arith.cmpi ne, %10, %c0_i32_9 : i32
    scf.if %11 {
      %c0_10 = arith.constant 0 : index
      %c0_11 = arith.constant 0 : index
      %12 = vector.load %arg6[%c0_10, %c0_11] : memref<128x128xf32, #tpu.memory_space<vmem>>, vector<128x128xf32>
      %c0_12 = arith.constant 0 : index
      %c0_13 = arith.constant 0 : index
      %13 = vector.load %arg5[%c0_12, %c0_13] : memref<1x128xf32, #tpu.memory_space<vmem>>, vector<1x128xf32>
      %14 = vector.broadcast %13 : vector<1x128xf32> to vector<128x128xf32>
      %15 = arith.addf %12, %14 : vector<128x128xf32>
      %cst_14 = arith.constant 0.000000e+00 : f32
      %16 = vector.broadcast %cst_14 : f32 to vector<128x128xf32>
      %17 = arith.subf %16, %15 : vector<128x128xf32>
      %18 = math.exp %17 : vector<128x128xf32>
      %cst_15 = arith.constant 1.000000e+00 : f32
      %19 = vector.broadcast %cst_15 : f32 to vector<128x128xf32>
      %20 = arith.addf %19, %18 : vector<128x128xf32>
      %cst_16 = arith.constant 1.000000e+00 : f32
      %21 = vector.broadcast %cst_16 : f32 to vector<128x128xf32>
      %22 = arith.divf %21, %20 : vector<128x128xf32>
      %23 = math.log1p %22 : vector<128x128xf32>
      %24 = arith.mulf %15, %23 : vector<128x128xf32>
      %c0_17 = arith.constant 0 : index
      %c0_18 = arith.constant 0 : index
      %25 = vector.load %arg6[%c0_17, %c0_18] : memref<128x128xf32, #tpu.memory_space<vmem>>, vector<128x128xf32>
      tpu.vector_store %arg6[%c0_17, %c0_18], %24 {strides = array<i32>} : memref<128x128xf32, #tpu.memory_space<vmem>>, vector<128x128xf32>,
    } else {
    }
    return
  }
  func.func @transform_0(%arg0: i32, %arg1: i32, %arg2: i32) -> (i32, i32) {
    %c0_i32 = arith.constant 0 : i32
    return %arg0, %arg2 : i32, i32
  }
  func.func @transform_1(%arg0: i32, %arg1: i32, %arg2: i32) -> (i32, i32) {
    %c0_i32 = arith.constant 0 : i32
    return %arg2, %arg1 : i32, i32
  }
  func.func @transform_2(%arg0: i32, %arg1: i32, %arg2: i32) -> (i32, i32) {
    %c0_i32 = arith.constant 0 : i32
    %c0_i32_0 = arith.constant 0 : i32
    return %c0_i32, %arg1 : i32, i32
  }
  func.func @transform_3(%arg0: i32, %arg1: i32, %arg2: i32) -> (i32, i32) {
    %c0_i32 = arith.constant 0 : i32
    return %arg0, %arg1 : i32, i32
  }
}

module attributes {stable_mosaic.version = 11 : i64} {
  func.func @_fused_matmul_kernel(%arg0: i32, %arg1: i32, %arg2: i32, %arg3: memref<128x256xbf16, #tpu.memory_space<vmem>>, %arg4: memref<256x128xbf16, #tpu.memory_space<vmem>>, %arg5: memref<1x128xf32, #tpu.memory_space<vmem>>, %arg6: memref<128x128xf32, #tpu.memory_space<vmem>>) attributes {dimension_semantics = [#tpu.dimension_semantics<parallel>, #tpu.dimension_semantics<parallel>, #tpu.dimension_semantics<arbitrary>], iteration_bounds = array<i64: 1, 1, 1>, scalar_prefetch = 0 : i64, scratch_operands = 0 : i64, tpu.core_type = #tpu.core_type<tc>, window_params = [{transform_indices = @transform_0, window_bounds = array<i64: 128, 256>}, {transform_indices = @transform_1, window_bounds = array<i64: 256, 128>}, {transform_indices = @transform_2, window_bounds = array<i64: 1, 128>}, {transform_indices = @transform_3, window_bounds = array<i64: 128, 128>}]} {
    %c0_i32 = arith.constant 0 : i32
    %0 = arith.cmpi eq, %arg2, %c0_i32 : i32
    %1 = arith.extui %0 : i1 to i32
    %c0_i32_0 = arith.constant 0 : i32
    %2 = arith.cmpi ne, %1, %c0_i32_0 : i32
    scf.if %2 {
      %cst_10 = arith.constant 0.000000e+00 : f32
      %12 = vector.broadcast %cst_10 : f32 to vector<128x128xf32>
      %c0_11 = arith.constant 0 : index
      %c0_12 = arith.constant 0 : index
      %13 = vector.load %arg6[%c0_11, %c0_12] : memref<128x128xf32, #tpu.memory_space<vmem>>, vector<128x128xf32>
      tpu.vector_store %arg6[%c0_11, %c0_12], %12 {strides = array<i32>} : memref<128x128xf32, #tpu.memory_space<vmem>>, vector<128x128xf32>,
    } else {
    }
    %c0 = arith.constant 0 : index
    %c0_1 = arith.constant 0 : index
    %3 = vector.load %arg6[%c0, %c0_1] : memref<128x128xf32, #tpu.memory_space<vmem>>, vector<128x128xf32>
    %c0_2 = arith.constant 0 : index
    %c0_3 = arith.constant 0 : index
    %4 = vector.load %arg3[%c0_2, %c0_3] : memref<128x256xbf16, #tpu.memory_space<vmem>>, vector<128x256xbf16>
    %c0_4 = arith.constant 0 : index
    %c0_5 = arith.constant 0 : index
    %5 = vector.load %arg4[%c0_4, %c0_5] : memref<256x128xbf16, #tpu.memory_space<vmem>>, vector<256x128xbf16>
    %cst = arith.constant dense<0.000000e+00> : vector<128x128xf32>
    %6 = tpu.matmul %4, %5, %cst {dimension_numbers = #tpu.dot_dimension_numbers<[1], [0], [0], [1], [0, 0, 1, 1], [], []>} : vector<128x256xbf16>, vector<256x128xbf16>, vector<128x128xf32> -> vector<128x128xf32>
    %7 = arith.addf %3, %6 : vector<128x128xf32>
    %c0_6 = arith.constant 0 : index
    %c0_7 = arith.constant 0 : index
    %8 = vector.load %arg6[%c0_6, %c0_7] : memref<128x128xf32, #tpu.memory_space<vmem>>, vector<128x128xf32>
    tpu.vector_store %arg6[%c0_6, %c0_7], %7 {strides = array<i32>} : memref<128x128xf32, #tpu.memory_space<vmem>>, vector<128x128xf32>,
    %c0_i32_8 = arith.constant 0 : i32
    %9 = arith.cmpi eq, %arg2, %c0_i32_8 : i32
    %10 = arith.extui %9 : i1 to i32
    %c0_i32_9 = arith.constant 0 : i32
    %11 = arith.cmpi ne, %10, %c0_i32_9 : i32
    scf.if %11 {
      %c0_10 = arith.constant 0 : index
      %c0_11 = arith.constant 0 : index
      %12 = vector.load %arg6[%c0_10, %c0_11] : memref<128x128xf32, #tpu.memory_space<vmem>>, vector<128x128xf32>
      %c0_12 = arith.constant 0 : index
      %c0_13 = arith.constant 0 : index
      %13 = vector.load %arg5[%c0_12, %c0_13] : memref<1x128xf32, #tpu.memory_space<vmem>>, vector<1x128xf32>
      %14 = vector.broadcast %13 : vector<1x128xf32> to vector<128x128xf32>
      %15 = arith.addf %12, %14 : vector<128x128xf32>
      %cst_14 = arith.constant 0.000000e+00 : f32
      %16 = vector.broadcast %cst_14 : f32 to vector<128x128xf32>
      %17 = arith.subf %16, %15 : vector<128x128xf32>
      %18 = math.exp %17 : vector<128x128xf32>
      %cst_15 = arith.constant 1.000000e+00 : f32
      %19 = vector.broadcast %cst_15 : f32 to vector<128x128xf32>
      %20 = arith.addf %19, %18 : vector<128x128xf32>
      %cst_16 = arith.constant 1.000000e+00 : f32
      %21 = vector.broadcast %cst_16 : f32 to vector<128x128xf32>
      %22 = arith.divf %21, %20 : vector<128x128xf32>
      %23 = math.log1p %22 : vector<128x128xf32>
      %24 = arith.mulf %15, %23 : vector<128x128xf32>
      %c0_17 = arith.constant 0 : index
      %c0_18 = arith.constant 0 : index
      %25 = vector.load %arg6[%c0_17, %c0_18] : memref<128x128xf32, #tpu.memory_space<vmem>>, vector<128x128xf32>
      tpu.vector_store %arg6[%c0_17, %c0_18], %24 {strides = array<i32>} : memref<128x128xf32, #tpu.memory_space<vmem>>, vector<128x128xf32>,
    } else {
    }
    return
  }
  func.func @transform_0(%arg0: i32, %arg1: i32, %arg2: i32) -> (i32, i32) {
    %c0_i32 = arith.constant 0 : i32
    return %arg0, %arg2 : i32, i32
  }
  func.func @transform_1(%arg0: i32, %arg1: i32, %arg2: i32) -> (i32, i32) {
    %c0_i32 = arith.constant 0 : i32
    return %arg2, %arg1 : i32, i32
  }
  func.func @transform_2(%arg0: i32, %arg1: i32, %arg2: i32) -> (i32, i32) {
    %c0_i32 = arith.constant 0 : i32
    %c0_i32_0 = arith.constant 0 : i32
    return %c0_i32, %arg1 : i32, i32
  }
  func.func @transform_3(%arg0: i32, %arg1: i32, %arg2: i32) -> (i32, i32) {
    %c0_i32 = arith.constant 0 : i32
    return %arg0, %arg1 : i32, i32
  }
}

</mosaic_0001>

<bundles_post_ra>
// kernel: bottleneck_logish_forward.3
= control target key start
LH: loop header
LB: loop body
LE: loop exit
PB: predicated region body
PF: predicated region fallthrough
CT: control target
= control target key end

     0   :  { %s1885_s12 = smov 0   ;;  %s1887_s13 = smov 0   ;;  %s2446_s0 = inlined_call_operand.vmem [shape: bf16[512,128], index: 0, kind: input, shape index: {}]   ;;  %s2447_s1 = inlined_call_operand.vmem [shape: bf16[128,128], index: 1, kind: input, shape index: {}]   ;;  %s2448_s2 = inlined_call_operand.vmem [shape: f32[1,128], index: 2, kind: input, shape index: {}]   ;;  %s2449_s3 = inlined_call_operand.vmem [shape: f32[512,128], index: 3, kind: output, shape index: {}]  }
   0x1   :  { %s1889_s14 = smov 0  }
   0x2 LB: > { %s32_s15 = sadd.s32 1, %s1859_s13  ;;  %p1480_p0 = scmp.ge.s32.totalorder %s1863_s14, 1  ;;  %s1863_s14 = sphi %s1889_s14, %s13_s14   ;;  %s1859_s13 = sphi %s1887_s13, %s2517_s13   ;;  %s1855_s12 = sphi %s1885_s12, %s2516_s12  }
   0x3   : > { %p34_p1 = scmp.ge.s32.totalorder %s32_s15, 2  ;;  %p188_p2 = scmp.lt.s32.totalorder %s1863_s14, 3 }
   0x5   : > { %s2519_s15 = smov (%p34_p1, %s32_s15), 0  ;;  %p189_p3 = pnand %p1480_p0, %p188_p2 }
   0x7   : > { %192 = sbr.rel (%p189_p3) target bundleno = 415 (0x19f), region = 32 }
   0xc   : > { %v1625_v0 = vld [vmem:[%s2447_s1 + $0x38] sm:$0xff]   ;;  %s1481_s18 = sshll.u32 %s1855_s12, 5  ;;  %v1626_v1 = vld [vmem:[%s2447_s1 + $0x30] sm:$0xff]   ;;  %v1627_v2 = vld [vmem:[%s2447_s1 + $0x28] sm:$0xff]  }
   0xd   : > { %p230_p4 = scmp.lt.s32.totalorder %s1481_s18, 63  ;;  %1536 = vmatprep.subr.bf16.mxu0 %v1625_v0  ;;  %1584 = vmatprep.subr.bf16.mxu1 %v1625_v0  ;;  %v1628_v3 = vld [vmem:[%s2447_s1 + $0x20] sm:$0xff]   ;;  %v1629_v6 = vld [vmem:[%s2447_s1 + $0x18] sm:$0xff]   ;;  %v1630_v7 = vld [vmem:[%s2447_s1 + $0x10] sm:$0xff]  }
   0xe   : > { %1537 = vmatpush3.bf16.msra.mxu0 %v1625_v0  ;;  %1592 = vmatpush3.bf16.msra.mxu1 %v1625_v0  ;;  %v1631_v8 = vld [vmem:[%s2447_s1 + $0x8] sm:$0xff]   ;;  %v1632_v9 = vld [vmem:[%s2447_s1] sm:$0xff]  }
   0xf   : > { %s2521_s18 = smov (!%p230_p4, %s1481_s18), 63  ;;  %1538 = vmatprep.subr.bf16.mxu0 %v1626_v1  ;;  %1585 = vmatprep.subr.bf16.mxu1 %v1626_v1  ;;  %v1954_v25 = vld [vmem:[%s2448_s2] ss:$0 sm:$0xff] }
  0x10   : > { %s1482_s23 = sshll.u32 %s2521_s18, 2  ;;  %s1484_s12 = sshll.u32 %s2521_s18, 3 }
  0x11   : > { %s1918_s26 = scalar_lea.vmem %s2446_s0, %s1482_s23  ;;  %s2138_s18 = scalar_lea.vmem %s2449_s3, %s1484_s12 }
  0x12   : > { %1539 = vmatpush3.bf16.msra.mxu0 %v1626_v1  ;;  %1593 = vmatpush3.bf16.msra.mxu1 %v1626_v1  ;;  %v1633_v4 = vld [vmem:[%s1918_s26] sm:$0xff]   ;;  %v1635_v10 = vld [vmem:[%s1918_s26 + $0x8] sm:$0xff]   ;;  %v1637_v12 = vld [vmem:[%s1918_s26 + $0x10] sm:$0xff]  }
  0x13   : > { %1540 = vmatprep.subr.bf16.mxu0 %v1627_v2  ;;  %1586 = vmatprep.subr.bf16.mxu1 %v1627_v2  ;;  %v1634_v5 = vld [vmem:[%s1918_s26 + $0x40] sm:$0xff]   ;;  %v1636_v11 = vld [vmem:[%s1918_s26 + $0x48] sm:$0xff]   ;;  %v1638_v13 = vld [vmem:[%s1918_s26 + $0x50] sm:$0xff]  }
  0x14   : > { %1552 = vmatprep.mubr.bf16.mxu0 %v1633_v4  ;;  %1568 = vmatprep.mubr.bf16.mxu1 %v1634_v5  ;;  %v1639_v14 = vld [vmem:[%s1918_s26 + $0x18] sm:$0xff]   ;;  %v1641_v16 = vld [vmem:[%s1918_s26 + $0x20] sm:$0xff]   ;;  %v1643_v18 = vld [vmem:[%s1918_s26 + $0x28] sm:$0xff]  }
  0x15   : > { %v1640_v15 = vld [vmem:[%s1918_s26 + $0x58] sm:$0xff]   ;;  %v1642_v17 = vld [vmem:[%s1918_s26 + $0x60] sm:$0xff]   ;;  %v1644_v19 = vld [vmem:[%s1918_s26 + $0x68] sm:$0xff]  }
  0x16   : > { %1541 = vmatpush3.bf16.msra.mxu0 %v1627_v2  ;;  %1594 = vmatpush3.bf16.msra.mxu1 %v1627_v2  ;;  %v1645_v20 = vld [vmem:[%s1918_s26 + $0x30] sm:$0xff]   ;;  %v1647_v22 = vld [vmem:[%s1918_s26 + $0x38] sm:$0xff]  }
  0x17   : > { %1542 = vmatprep.subr.bf16.mxu0 %v1628_v3  ;;  %1587 = vmatprep.subr.bf16.mxu1 %v1628_v3  ;;  %v1646_v21 = vld [vmem:[%s1918_s26 + $0x70] sm:$0xff]   ;;  %v1648_v23 = vld [vmem:[%s1918_s26 + $0x78] sm:$0xff]  }
  0x1a   : > { %1543 = vmatpush3.bf16.msra.mxu0 %v1628_v3  ;;  %1595 = vmatpush3.bf16.msra.mxu1 %v1628_v3 }
  0x1b   : > { %1544 = vmatprep.subr.bf16.mxu0 %v1629_v6  ;;  %1588 = vmatprep.subr.bf16.mxu1 %v1629_v6 }
  0x1e   : > { %1545 = vmatpush3.bf16.msra.mxu0 %v1629_v6  ;;  %1596 = vmatpush3.bf16.msra.mxu1 %v1629_v6 }
  0x1f   : > { %1546 = vmatprep.subr.bf16.mxu0 %v1630_v7  ;;  %1589 = vmatprep.subr.bf16.mxu1 %v1630_v7 }
  0x22   : > { %1547 = vmatpush3.bf16.msra.mxu0 %v1630_v7  ;;  %1597 = vmatpush3.bf16.msra.mxu1 %v1630_v7 }
  0x23   : > { %1548 = vmatprep.subr.bf16.mxu0 %v1631_v8  ;;  %1590 = vmatprep.subr.bf16.mxu1 %v1631_v8 }
  0x26   : > { %1549 = vmatpush3.bf16.msra.mxu0 %v1631_v8  ;;  %1598 = vmatpush3.bf16.msra.mxu1 %v1631_v8 }
  0x27   : > { %1550 = vmatprep.subr.bf16.mxu0 %v1632_v9  ;;  %1591 = vmatprep.subr.bf16.mxu1 %v1632_v9 }
  0x2a   : > { %1551 = vmatpush3.bf16.msra.mxu0 %v1632_v9  ;;  %1599 = vmatpush3.bf16.msra.mxu1 %v1632_v9 }
  0x2d   : > { %1553 = vmatmul.mubr.bf16.vlgmr.msra.gmra.mxu0 %v1635_v10  ;;  %1569 = vmatmul.mubr.bf16.vlgmr.msra.gmra.mxu1 %v1636_v11 }
  0x2e   : > { %1556 = vmatprep.mubr.bf16.mxu0 %v1637_v12  ;;  %1572 = vmatprep.mubr.bf16.mxu1 %v1638_v13 }
  0x35   : > { %1557 = vmatmul.mubr.bf16.gmra.mxu0 %v1639_v14  ;;  %1573 = vmatmul.mubr.bf16.gmra.mxu1 %v1640_v15 }
  0x36   : > { %1560 = vmatprep.mubr.bf16.mxu0 %v1641_v16  ;;  %1576 = vmatprep.mubr.bf16.mxu1 %v1642_v17 }
  0x3d   : > { %1561 = vmatmul.mubr.bf16.gmra.mxu0 %v1643_v18  ;;  %1577 = vmatmul.mubr.bf16.gmra.mxu1 %v1644_v19 }
  0x3e   : > { %1564 = vmatprep.mubr.bf16.mxu0 %v1645_v20  ;;  %1580 = vmatprep.mubr.bf16.mxu1 %v1646_v21 }
  0x45   : > { %1565 = vmatmul.mubr.bf16.gmra.mxu0 %v1647_v22  ;;  %1581 = vmatmul.mubr.bf16.gmra.mxu1 %v1648_v23 }
  0xed   : > { %v1554_v24 = vpop.f32.mrf.mxu0  ;;  %v1570_v26 = vpop.f32.mrf.mxu1 }
  0xee   : > { %v1957_v29 = vadd.f32 %v1554_v24, %v1954_v25  ;;  %v1960_v30 = vadd.f32 %v1570_v26, %v1954_v25 }
  0xef   : > { %v554_v27 = vpop.f32.mrf.mxu0  ;;  %v618_v28 = vpop.f32.mrf.mxu1 }
  0xf0   : > { %v821_v33 = vsub.f32 0.0, %v1957_v29  ;;  %v837_v34 = vsub.f32 0.0, %v1960_v30  ;;  %v1965_v35 = vadd.f32 %v1954_v25, %v554_v27  ;;  %v1968_v36 = vadd.f32 %v1954_v25, %v618_v28 }
  0xf1   : > { %v1555_v31 = vpop.f32.mrf.mxu0  ;;  %v1571_v32 = vpop.f32.mrf.mxu1 }
  0xf2   : > { %v855_v39 = vmul.f32 1.442695, %v821_v33  ;;  %v887_v40 = vmul.f32 1.442695, %v837_v34  ;;  %v819_v41 = vsub.f32 0.0, %v1965_v35  ;;  %v835_v42 = vsub.f32 0.0, %v1968_v36 }
  0xf3   : > { %v557_v37 = vpop.f32.mrf.mxu0  ;;  %v621_v38 = vpop.f32.mrf.mxu1  ;;  %v1973_v43 = vadd.f32 %v1555_v31, %v1954_v25  ;;  %v1976_v44 = vadd.f32 %v1571_v32, %v1954_v25 }
  0xf4   : > { %1649 = vpow2.f32 %v855_v39  ;;  %v851_v47 = vmul.f32 1.442695, %v819_v41  ;;  %v883_v48 = vmul.f32 1.442695, %v835_v42  ;;  %v1981_v51 = vadd.f32 %v1954_v25, %v557_v37 }
  0xf5   : > { %v1558_v45 = vpop.f32.mrf.mxu0  ;;  %v1574_v46 = vpop.f32.mrf.mxu1  ;;  %1651 = vpow2.f32 %v887_v40  ;;  %v822_v49 = vsub.f32 0.0, %v1973_v43  ;;  %v838_v50 = vsub.f32 0.0, %v1976_v44  ;;  %v1984_v54 = vadd.f32 %v1954_v25, %v621_v38 }
  0xf6   : > { %1653 = vpow2.f32 %v851_v47  ;;  %v1987_v55 = vadd.f32 %v1558_v45, %v1954_v25  ;;  %v820_v58 = vsub.f32 0.0, %v1981_v51  ;;  %v1993_v63 = vadd.f32 %v1574_v46, %v1954_v25 }
  0xf7   : > { %v570_v52 = vpop.f32.mrf.mxu0  ;;  %v634_v53 = vpop.f32.mrf.mxu1  ;;  %1655 = vpow2.f32 %v883_v48  ;;  %v857_v56 = vmul.f32 1.442695, %v822_v49  ;;  %v889_v57 = vmul.f32 1.442695, %v838_v50  ;;  %v836_v61 = vsub.f32 0.0, %v1984_v54 }
  0xf8   : > { %v825_v62 = vsub.f32 0.0, %v1987_v55  ;;  %v853_v0 = vmul.f32 1.442695, %v820_v58  ;;  %v841_v5 = vsub.f32 0.0, %v1993_v63  ;;  %v1997_v6 = vadd.f32 %v1954_v25, %v570_v52 }
  0xf9   : > { %v1559_v59 = vpop.f32.mrf.mxu0  ;;  %v1575_v60 = vpop.f32.mrf.mxu1  ;;  %1657 = vpow2.f32 %v857_v56  ;;  %v885_v3 = vmul.f32 1.442695, %v836_v61  ;;  %v2000_v7 = vadd.f32 %v1954_v25, %v634_v53 }
  0xfa   : > { %1659 = vpow2.f32 %v889_v57  ;;  %v863_v4 = vmul.f32 1.442695, %v825_v62  ;;  %v2003_v8 = vadd.f32 %v1559_v59, %v1954_v25  ;;  %v895_v10 = vmul.f32 1.442695, %v841_v5 }
  0xfb   : > { %v573_v1 = vpop.f32.mrf.mxu0  ;;  %v637_v2 = vpop.f32.mrf.mxu1  ;;  %1661 = vpow2.f32 %v853_v0  ;;  %v823_v11 = vsub.f32 0.0, %v1997_v6  ;;  %v839_v12 = vsub.f32 0.0, %v2000_v7  ;;  %v2009_v19 = vadd.f32 %v1575_v60, %v1954_v25 }
  0xfc   : > { %1663 = vpow2.f32 %v885_v3  ;;  %v826_v13 = vsub.f32 0.0, %v2003_v8  ;;  %v2012_v21 = vadd.f32 %v1954_v25, %v573_v1  ;;  %v2016_v37 = vadd.f32 %v1954_v25, %v637_v2 }
  0xfd   : > { %v1562_v9 = vpop.f32.mrf.mxu0  ;;  %1665 = vpow2.f32 %v863_v4  ;;  %v1578_v14 = vpop.f32.mrf.mxu1  ;;  %v859_v15 = vmul.f32 1.442695, %v823_v11  ;;  %v891_v16 = vmul.f32 1.442695, %v839_v12  ;;  %v842_v33 = vsub.f32 0.0, %v2009_v19 }
  0xfe   : > { %1667 = vpow2.f32 %v895_v10  ;;  %v865_v17 = vmul.f32 1.442695, %v826_v13  ;;  %2458 = vst [vmem:[#allocation2_spill] sm:$0xff] %v2016_v37  ;;  %v824_v40 = vsub.f32 0.0, %v2012_v21  ;;  %v2020_v41 = vadd.f32 %v1562_v9, %v1954_v25 }
  0xff   : > { %v586_v18 = vpop.f32.mrf.mxu0  ;;  %1669 = vpow2.f32 %v859_v15  ;;  %v650_v22 = vpop.f32.mrf.mxu1  ;;  %v2023_v42 = vadd.f32 %v1578_v14, %v1954_v25  ;;  %v897_v52 = vmul.f32 1.442695, %v842_v33  ;;  %v840_v58 = vsub.f32 0.0, %v2016_v37 }
 0x100   : > { %1671 = vpow2.f32 %v891_v16  ;;  %2459 = vst [vmem:[#allocation3_spill] sm:$0xff] %v2020_v41  ;;  %v2026_v47 = vadd.f32 %v1954_v25, %v586_v18  ;;  %v2029_v53 = vadd.f32 %v1954_v25, %v650_v22  ;;  %v829_v62 = vsub.f32 0.0, %v2020_v41 }
 0x101   : > { %v1650_v20 = vpop.eup %1649  ;;  %1673 = vpow2.f32 %v865_v17  ;;  %v1563_v28 = vpop.f32.mrf.mxu0  ;;  %2460 = vst [vmem:[#allocation4_spill] sm:$0xff] %v2023_v42  ;;  %v845_v3 = vsub.f32 0.0, %v2023_v42  ;;  %v861_v11 = vmul.f32 1.442695, %v824_v40  ;;  %v893_v16 = vmul.f32 1.442695, %v840_v58 }
 0x102   : > { %v1652_v23 = vpop.eup %1651  ;;  %v917_v24 = vadd.f32 1.0, %v1650_v20  ;;  %v1579_v38 = vpop.f32.mrf.mxu1  ;;  %2461 = vst [vmem:[#allocation5_spill] sm:$0xff] %v2026_v47  ;;  %2462 = vst [vmem:[#allocation6_spill] sm:$0xff] %v2029_v53  ;;  %v2033_v59 = vadd.f32 %v1563_v28, %v1954_v25  ;;  %v827_v4 = vsub.f32 0.0, %v2026_v47  ;;  %v843_v9 = vsub.f32 0.0, %v2029_v53 }
 0x103   : > { %v1654_v26 = vpop.eup %1653  ;;  %v933_v27 = vadd.f32 1.0, %v1652_v23  ;;  %v589_v48 = vpop.f32.mrf.mxu0  ;;  %v2040_v10 = vadd.f32 %v1579_v38, %v1954_v25  ;;  %v2046_v17 = vmul.f32 1.442695, %v829_v62  ;;  %v2048_v23 = vmul.f32 1.442695, %v845_v3 }
 0x104   : > { %v1656_v31 = vpop.eup %1655  ;;  %1675 = vrcp.f32 %v917_v24  ;;  %v915_v32 = vadd.f32 1.0, %v1654_v26  ;;  %2463 = vst [vmem:[#allocation7_spill] sm:$0xff] %v2033_v59  ;;  %v653_v0 = vpop.f32.mrf.mxu1  ;;  %v830_v12 = vsub.f32 0.0, %v2033_v59  ;;  %v2044_v13 = vadd.f32 %v1954_v25, %v589_v48 }
 0x105   : > { %1677 = vrcp.f32 %v933_v27  ;;  %v931_v34 = vadd.f32 1.0, %v1656_v31  ;;  %2464 = vst [vmem:[#allocation8_spill] sm:$0xff] %v2040_v10  ;;  %v1566_v14 = vpop.f32.mrf.mxu0  ;;  %v2050_v24 = vmul.f32 1.442695, %v827_v4  ;;  %v2052_v27 = vmul.f32 1.442695, %v843_v9 }
 0x106   : > { %v1658_v39 = vpop.eup %1657  ;;  %1679 = vrcp.f32 %v915_v32  ;;  %2465 = vst [vmem:[#allocation9_spill] sm:$0xff] %v2044_v13  ;;  %v1582_v18 = vpop.f32.mrf.mxu1  ;;  %v846_v28 = vsub.f32 0.0, %v2040_v10  ;;  %v2055_v32 = vmul.f32 1.442695, %v830_v12  ;;  %v828_v33 = vsub.f32 0.0, %v2044_v13 }
 0x107   : > { %v1660_v45 = vpop.eup %1659  ;;  %1681 = vrcp.f32 %v931_v34  ;;  %v918_v46 = vadd.f32 1.0, %v1658_v39  ;;  %v2059_v40 = vadd.f32 %v1954_v25, %v653_v0 }
 0x108   : > { %v1662_v49 = vpop.eup %1661  ;;  %v934_v50 = vadd.f32 1.0, %v1660_v45 }
 0x109   : > { %v1664_v56 = vpop.eup %1663  ;;  %1683 = vrcp.f32 %v918_v46  ;;  %v916_v57 = vadd.f32 1.0, %v1662_v49 }
 0x10a   : > { %v1666_v60 = vpop.eup %1665  ;;  %1685 = vrcp.f32 %v934_v50  ;;  %v932_v61 = vadd.f32 1.0, %v1664_v56  ;;  %v2061_v56 = vmul.f32 1.442695, %v846_v28 }
 0x10b   : > { %v1668_v1 = vpop.eup %1667  ;;  %1687 = vrcp.f32 %v916_v57  ;;  %v921_v2 = vadd.f32 1.0, %v1666_v60  ;;  %v2064_v57 = vadd.f32 %v1566_v14, %v1954_v25  ;;  %v2066_v60 = vmul.f32 1.442695, %v828_v33 }
 0x10c   : > { %v937_v5 = vadd.f32 1.0, %v1668_v1  ;;  %1689 = vrcp.f32 %v932_v61  ;;  %v1670_v15 = vpop.eup %1669  ;;  %v2069_v61 = vadd.f32 %v1582_v18, %v1954_v25 }
 0x10d   : > { %1691 = vpow2.f32 %v897_v52  ;;  %v1672_v20 = vpop.eup %1671  ;;  %v919_v22 = vadd.f32 1.0, %v1670_v15 }
 0x10e   : > { %1693 = vrcp.f32 %v921_v2  ;;  %v1674_v26 = vpop.eup %1673  ;;  %v935_v39 = vadd.f32 1.0, %v1672_v20 }
 0x10f   : > { %1695 = vrcp.f32 %v937_v5  ;;  %v922_v58 = vadd.f32 1.0, %v1674_v26 }
 0x110   : > { %1697 = vpow2.f32 %v861_v11 }
 0x111   : > { %v1676_v31 = vpop.eup %1675  ;;  %1699 = vpow2.f32 %v893_v16 }
 0x112   : > { %v1678_v34 = vpop.eup %1677  ;;  %v1029_v38 = vadd.f32 1.0, %v1676_v31  ;;  %v1032_v46 = vmul.f32 -0.5, %v1676_v31  ;;  %1701 = vrcp.f32 %v919_v22  ;;  %v1035_v5 = vand.u32 2147483647, %v1676_v31 }
 0x113   : > { %v1680_v45 = vpop.eup %1679  ;;  %v1173_v48 = vadd.f32 1.0, %v1678_v34  ;;  %v1176_v49 = vmul.f32 -0.5, %v1678_v34  ;;  %v1179_v12 = vand.u32 2147483647, %v1678_v34 }
 0x114   : > { %v1682_v50 = vpop.eup %1681  ;;  %1703 = vlog2.f32 %v1029_v38  ;;  %v1011_v52 = vadd.f32 1.0, %v1680_v45  ;;  %v1014_v0 = vmul.f32 -0.5, %v1680_v45  ;;  %v1033_v4 = vadd.f32 1.0, %v1032_v46 }
 0x115   : > { %1705 = vlog2.f32 %v1173_v48  ;;  %v1155_v1 = vadd.f32 1.0, %v1682_v50  ;;  %v1177_v9 = vadd.f32 1.0, %v1176_v49  ;;  %v1158_v14 = vmul.f32 -0.5, %v1682_v50 }
 0x116   : > { %v1684_v62 = vpop.eup %1683  ;;  %1707 = vlog2.f32 %v1011_v52  ;;  %v1017_v16 = vand.u32 2147483647, %v1680_v45  ;;  %v1015_v26 = vadd.f32 1.0, %v1014_v0  ;;  %vm2083_vm0 = vcmp.lt.f32.partialorder %v1035_v5, 0.0004427343 }
 0x117   : > { %v2072_v3 = vpop.eup %1685  ;;  %1709 = vrcp.f32 %v935_v39  ;;  %v1038_v15 = vadd.f32 1.0, %v1684_v62  ;;  %v1041_v18 = vmul.f32 -0.5, %v1684_v62  ;;  %v1034_v39 = vmul.f32 %v1676_v31, %v1033_v4 }
 0x118   : > { %v2074_v11 = vpop.eup %1687  ;;  %1711 = vlog2.f32 %v1155_v1  ;;  %v1182_v28 = vadd.f32 1.0, %v2072_v3  ;;  %v1185_v33 = vmul.f32 -0.5, %v2072_v3  ;;  %v1178_v48 = vmul.f32 %v1678_v34, %v1177_v9 }
 0x119   : > { %1713 = vrcp.f32 %v922_v58  ;;  %v2077_v22 = vpop.eup %1689  ;;  %v1020_v49 = vadd.f32 1.0, %v2074_v11  ;;  %vm2090_vm1 = vcmp.lt.f32.partialorder %v1179_v12, 0.0004427343  ;;  %v1159_v0 = vadd.f32 1.0, %v1158_v14 }
 0x11a   : > { %1715 = vlog2.f32 %v1038_v15  ;;  %v2081_v38 = vpop.eup %1691  ;;  %v1161_v1 = vand.u32 2147483647, %v1682_v50  ;;  %v1023_v15 = vmul.f32 -0.5, %v2074_v11  ;;  %v1042_v31 = vadd.f32 1.0, %v1041_v18 }
 0x11b   : > { %v2088_v52 = vpop.eup %1693  ;;  %1717 = vlog2.f32 %v1182_v28  ;;  %v1044_v4 = vand.u32 2147483647, %v1684_v62  ;;  %v1164_v34 = vadd.f32 1.0, %v2077_v22  ;;  %v1016_v9 = vmul.f32 %v1680_v45, %v1015_v26 }
 0x11c   : > { %v2095_v20 = vpop.eup %1695  ;;  %1719 = vlog2.f32 %v1020_v49  ;;  %vm2100_vm2 = vcmp.lt.f32.partialorder %v1017_v16, 0.0004427343  ;;  %v1186_v14 = vadd.f32 1.0, %v1185_v33  ;;  %v1024_v2 = vadd.f32 1.0, %v1023_v15 }
 0x11d   : > { %v2098_v5 = vpop.eup %1697  ;;  %v1188_v13 = vand.u32 2147483647, %v2072_v3  ;;  %1721 = vlog2.f32 %v1164_v34  ;;  %v1167_v18 = vmul.f32 -0.5, %v2077_v22  ;;  %v1065_v49 = vadd.f32 1.0, %v2088_v52 }
 0x11e   : > { %v2104_v28 = vpop.eup %1699  ;;  %v1160_v59 = vmul.f32 %v1682_v50, %v1159_v0  ;;  %vm2111_vm3 = vcmp.lt.f32.partialorder %v1161_v1, 0.0004427343  ;;  %v1026_v16 = vand.u32 2147483647, %v2074_v11  ;;  %v1068_v26 = vmul.f32 -0.5, %v2088_v52 }
 0x11f   : > { %v2109_v10 = vpop.eup %1701  ;;  %v1043_v15 = vmul.f32 %v1684_v62, %v1042_v31  ;;  %vm2118_vm4 = vcmp.lt.f32.partialorder %v1044_v4, 0.0004427343  ;;  %1723 = vlog2.f32 %v1065_v49  ;;  %v1209_v53 = vadd.f32 1.0, %v2095_v20 }
 0x120   : > { %v1187_v0 = vmul.f32 %v2072_v3, %v1186_v14  ;;  %v2125_v1 = vmul.f32 %v2074_v11, %v1024_v2  ;;  %v1170_v42 = vand.u32 2147483647, %v2077_v22  ;;  %vm2128_vm5 = vcmp.lt.f32.partialorder %v1188_v13, 0.0004427343 }
 0x121   : > { %v1704_v33 = vpop.eup %1703  ;;  %v1168_v31 = vadd.f32 1.0, %v1167_v18  ;;  %v1071_v4 = vand.u32 2147483647, %v2088_v52  ;;  %1725 = vlog2.f32 %v1209_v53  ;;  %vm2142_vm6 = vcmp.lt.f32.partialorder %v1026_v16, 0.0004427343 }
 0x122   : > { %v1706_v47 = vpop.eup %1705  ;;  %v1031_v50 = vmul.f32 0.6931472, %v1704_v33  ;;  %v1069_v3 = vadd.f32 1.0, %v1068_v26  ;;  %v1047_v11 = vadd.f32 1.0, %v2109_v10  ;;  %v1212_v33 = vmul.f32 -0.5, %v2095_v20 }
 0x123   : > { %v1708_v41 = vpop.eup %1707  ;;  %v1175_v37 = vmul.f32 0.6931472, %v1706_v47  ;;  %vm2159_vm7 = vcmp.lt.f32.partialorder %v1170_v42, 0.0004427343  ;;  %v1169_v12 = vmul.f32 %v2077_v22, %v1168_v31  ;;  %vm2169_vm8 = vcmp.lt.f32.partialorder %v1071_v4, 0.0004427343 }
 0x124   : > { %v2133_v49 = vpop.eup %1709  ;;  %v1037_v2 = vsel %vm2083_vm0, %v1034_v39, %v1031_v50  ;;  %v1013_v47 = vmul.f32 0.6931472, %v1708_v41  ;;  %v1215_v39 = vand.u32 2147483647, %v2095_v20  ;;  %1727 = vlog2.f32 %v1047_v11 }
 0x125   : > { %v1712_v53 = vpop.eup %1711  ;;  %v1301_v14 = vmul.f32 %v1037_v2, %v1957_v29  ;;  %v1181_v18 = vsel %vm2090_vm1, %v1178_v48, %v1175_v37  ;;  %v1050_v48 = vmul.f32 -0.5, %v2109_v10  ;;  %v1191_v58 = vadd.f32 1.0, %v2133_v49  ;;  %v666_v37 = vpop.f32.mrf.mxu1 }
 0x126   : > { %v2152_v46 = vpop.eup %1713  ;;  %v1317_v41 = vmul.f32 %v1181_v18, %v1960_v30  ;;  %v1019_v16 = vsel %vm2100_vm2, %v1016_v9, %v1013_v47  ;;  %v1157_v26 = vmul.f32 0.6931472, %v1712_v53  ;;  %v1070_v47 = vmul.f32 %v2088_v52, %v1069_v3 }
 0x127   : > { %v1716_v50 = vpop.eup %1715  ;;  %1333 = vst [vmem:[%s2138_s18 + $0x10] sm:$0xff] %v1301_v14  ;;  %v1299_v29 = vmul.f32 %v1019_v16, %v1965_v35  ;;  %v1213_v11 = vadd.f32 1.0, %v1212_v33  ;;  %1729 = vlog2.f32 %v1191_v58  ;;  %vm2178_vm9 = vcmp.lt.f32.partialorder %v1215_v39, 0.0004427343 }
 0x128   : > { %1349 = vst [vmem:[%s2138_s18 + $0x90] sm:$0xff] %v1317_v41  ;;  %v1163_v30 = vsel %vm2111_vm3, %v1160_v59, %v1157_v26  ;;  %v1040_v9 = vmul.f32 0.6931472, %v1716_v50  ;;  %v1718_v35 = vpop.eup %1717  ;;  %v1194_v31 = vmul.f32 -0.5, %v2133_v49  ;;  %v1051_v14 = vadd.f32 1.0, %v1050_v48 }
 0x129   : > { %1331 = vst [vmem:[%s2138_s18] sm:$0xff] %v1299_v29  ;;  %v1315_v42 = vmul.f32 %v1163_v30, %v1968_v36  ;;  %v1720_v53 = vpop.eup %1719  ;;  %v1184_v45 = vmul.f32 0.6931472, %v1718_v35  ;;  %v1074_v52 = vadd.f32 1.0, %v2152_v46  ;;  %v1197_v18 = vand.u32 2147483647, %v2133_v49 }
 0x12a   : > { %v1046_v59 = vsel %vm2118_vm4, %v1043_v15, %v1040_v9  ;;  %v1022_v36 = vmul.f32 0.6931472, %v1720_v53  ;;  %v1722_v3 = vpop.eup %1721  ;;  %v1053_v15 = vand.u32 2147483647, %v2109_v10  ;;  %v938_v33 = vadd.f32 1.0, %v2081_v38 }
 0x12b   : > { %1347 = vst [vmem:[%s2138_s18 + $0x80] sm:$0xff] %v1315_v42  ;;  %v1302_v4 = vmul.f32 %v1046_v59, %v1973_v43  ;;  %v1190_v34 = vsel %vm2128_vm5, %v1187_v0, %v1184_v45  ;;  %v1166_v41 = vmul.f32 0.6931472, %v1722_v3  ;;  %1731 = vlog2.f32 %v1074_v52 }
 0x12c   : > { %v1318_v39 = vmul.f32 %v1190_v34, %v1976_v44  ;;  %v1028_v43 = vsel %vm2142_vm6, %v2125_v1, %v1022_v36  ;;  %v1724_v16 = vpop.eup %1723  ;;  %v1214_v0 = vmul.f32 %v2095_v20, %v1213_v11  ;;  %v1195_v26 = vadd.f32 1.0, %v1194_v31  ;;  %v602_v1 = vpop.f32.mrf.mxu0 }
 0x12d   : > { %1334 = vst [vmem:[%s2138_s18 + $0x18] sm:$0xff] %v1302_v4  ;;  %v1300_v62 = vmul.f32 %v1028_v43, %v1981_v51  ;;  %1733 = vrcp.f32 %v938_v33  ;;  %v1172_v38 = vsel %vm2159_vm7, %v1169_v12, %v1166_v41  ;;  %v1067_v44 = vmul.f32 0.6931472, %v1724_v16 }
 0x12e   : > { %1350 = vst [vmem:[%s2138_s18 + $0x98] sm:$0xff] %v1318_v39  ;;  %v920_v50 = vadd.f32 1.0, %v2098_v5  ;;  %v936_v13 = vadd.f32 1.0, %v2104_v28  ;;  %v1726_v29 = vpop.eup %1725  ;;  %v1316_v48 = vmul.f32 %v1172_v38, %v1984_v54  ;;  %v1052_v51 = vmul.f32 %v2109_v10, %v1051_v14 }
 0x12f   : > { %1332 = vst [vmem:[%s2138_s18 + $0x8] sm:$0xff] %v1300_v62  ;;  %vm2206_vm10 = vcmp.lt.f32.partialorder %v1053_v15, 0.0004427343  ;;  %1735 = vpow2.f32 %v2046_v17  ;;  %v1073_v5 = vsel %vm2169_vm8, %v1070_v47, %v1067_v44  ;;  %v1211_v58 = vmul.f32 0.6931472, %v1726_v29  ;;  %v1567_v44 = vpop.f32.mrf.mxu0 }
 0x130   : > { %vm2213_vm11 = vcmp.lt.f32.partialorder %v1197_v18, 0.0004427343  ;;  %1737 = vrcp.f32 %v920_v50  ;;  %1348 = vst [vmem:[%s2138_s18 + $0x88] sm:$0xff] %v1316_v48  ;;  %v1305_v54 = vmul.f32 %v1073_v5, %v1987_v55  ;;  %v1077_v10 = vmul.f32 -0.5, %v2152_v46 }
 0x131   : > { %1739 = vrcp.f32 %v936_v13  ;;  %v1728_v30 = vpop.eup %1727  ;;  %v1217_v17 = vsel %vm2178_vm9, %v1214_v0, %v1211_v58  ;;  %v1196_v9 = vmul.f32 %v2133_v49, %v1195_v26  ;;  %v849_v55 = vsub.f32 0.0, %v2069_v61  ;;  %v605_v58 = vpop.f32.mrf.mxu0 }
 0x132   : > { %1741 = vpow2.f32 %v2048_v23  ;;  %1337 = vst [vmem:[%s2138_s18 + $0x30] sm:$0xff] %v1305_v54  ;;  %v1321_v12 = vmul.f32 %v1217_v17, %v1993_v63  ;;  %v1049_v2 = vmul.f32 0.6931472, %v1728_v30  ;;  %v2490_v35 = vsub.f32 0.0, %v2059_v40 }
 0x133   : > { %1743 = vpow2.f32 %v2050_v24  ;;  %v2232_v47 = vadd.f32 %v1954_v25, %v602_v1  ;;  %v2235_v49 = vadd.f32 %v1954_v25, %v666_v37  ;;  %v1078_v24 = vadd.f32 1.0, %v1077_v10  ;;  %v1583_v1 = vpop.f32.mrf.mxu1 }
 0x134   : > { %1745 = vpow2.f32 %v2052_v27  ;;  %v901_v42 = vmul.f32 1.442695, %v2490_v35  ;;  %v1730_v23 = vpop.eup %1729  ;;  %1353 = vst [vmem:[%s2138_s18 + $0xb0] sm:$0xff] %v1321_v12  ;;  %v1055_v63 = vsel %vm2206_vm10, %v1052_v51, %v1049_v2  ;;  %v2491_v27 = vsub.f32 0.0, %v2064_v57 }
 0x135   : > { %1747 = vpow2.f32 %v2055_v32  ;;  %v1303_v53 = vmul.f32 %v1055_v63, %v1997_v6  ;;  %v1193_v59 = vmul.f32 0.6931472, %v1730_v23  ;;  %v831_v45 = vsub.f32 0.0, %v2232_v47 }
 0x136   : > { %v879_v11 = vmul.f32 1.442695, %v2491_v27  ;;  %1749 = vpow2.f32 %v2061_v56  ;;  %v1080_v22 = vand.u32 2147483647, %v2152_v46  ;;  %v911_v31 = vmul.f32 1.442695, %v849_v55 }
 0x137   : > { %1751 = vpow2.f32 %v2066_v60  ;;  %v847_v4 = vsub.f32 0.0, %v2235_v49  ;;  %1335 = vst [vmem:[%s2138_s18 + $0x20] sm:$0xff] %v1303_v53  ;;  %v1199_v32 = vsel %vm2213_vm11, %v1196_v9, %v1193_v59  ;;  %v875_v36 = vmul.f32 1.442695, %v831_v45  ;;  %v669_v9 = vpop.f32.mrf.mxu1 }
 0x138   : > { %1753 = vpow2.f32 %v901_v42  ;;  %v1732_v6 = vpop.eup %1731  ;;  %v1319_v14 = vmul.f32 %v1199_v32, %v2000_v7  ;;  %v1079_v3 = vmul.f32 %v2152_v46, %v1078_v24  ;;  %vm1081_vm12 = vcmp.lt.f32.partialorder %v1080_v22, 0.0004427343 }
 0x139   : > { %v1076_v52 = vmul.f32 0.6931472, %v1732_v6  ;;  %1755 = vpow2.f32 %v879_v11  ;;  %v907_v34 = vmul.f32 1.442695, %v847_v4  ;;  %v2271_v55 = vadd.f32 %v1567_v44, %v1954_v25 }
 0x13a   : > { %v2253_v56 = vpop.eup %1733  ;;  %1351 = vst [vmem:[%s2138_s18 + $0xa0] sm:$0xff] %v1319_v14  ;;  %1757 = vpow2.f32 %v911_v31  ;;  %v2275_v63 = vadd.f32 %v1583_v1, %v1954_v25  ;;  %v2281_v32 = vadd.f32 %v1954_v25, %v605_v58 }
 0x13b   : > { %v1218_v60 = vadd.f32 1.0, %v2253_v56  ;;  %v1082_v18 = vsel %vm1081_vm12, %v1079_v3, %v1076_v52  ;;  %1759 = vpow2.f32 %v875_v36  ;;  %v1224_v2 = vand.u32 2147483647, %v2253_v56 }
 0x13c   : > { %v1736_v15 = vpop.eup %1735  ;;  %v1306_v7 = vmul.f32 %v1082_v18, %v2003_v8  ;;  %v1221_v8 = vmul.f32 -0.5, %v2253_v56  ;;  %v834_v4 = vsub.f32 0.0, %v2271_v55  ;;  %v850_v52 = vsub.f32 0.0, %v2275_v63 }
 0x13d   : > { %v2258_v33 = vpop.eup %1737  ;;  %1761 = vlog2.f32 %v1218_v60  ;;  %v925_v43 = vadd.f32 1.0, %v1736_v15  ;;  %vm1225_vm13 = vcmp.lt.f32.partialorder %v1224_v2, 0.0004427343  ;;  %v2287_v15 = vadd.f32 %v1954_v25, %v669_v9 }
 0x13e   : > { %v2261_v39 = vpop.eup %1739  ;;  %v1056_v46 = vadd.f32 1.0, %v2258_v33  ;;  %1338 = vst [vmem:[%s2138_s18 + $0x38] sm:$0xff] %v1306_v7  ;;  %1763 = vpow2.f32 %v907_v34  ;;  %v1059_v5 = vmul.f32 -0.5, %v2258_v33  ;;  %v1222_v28 = vadd.f32 1.0, %v1221_v8 }
 0x13f   : > { %v1742_v41 = vpop.eup %1741  ;;  %v1200_v16 = vadd.f32 1.0, %v2261_v39  ;;  %v1203_v30 = vmul.f32 -0.5, %v2261_v39  ;;  %v1062_v23 = vand.u32 2147483647, %v2258_v33  ;;  %v1206_v31 = vand.u32 2147483647, %v2261_v39 }
 0x140   : > { %v1744_v62 = vpop.eup %1743  ;;  %1765 = vlog2.f32 %v1056_v46  ;;  %v941_v0 = vadd.f32 1.0, %v1742_v41  ;;  %v1060_v42 = vadd.f32 1.0, %v1059_v5  ;;  %v1223_v27 = vmul.f32 %v2253_v56, %v1222_v28 }
 0x141   : > { %v1746_v26 = vpop.eup %1745  ;;  %1767 = vlog2.f32 %v1200_v16  ;;  %v923_v38 = vadd.f32 1.0, %v1744_v62  ;;  %v1204_v59 = vadd.f32 1.0, %v1203_v30  ;;  %vm1063_vm14 = vcmp.lt.f32.partialorder %v1062_v23, 0.0004427343 }
 0x142   : > { %v1748_v50 = vpop.eup %1747  ;;  %1769 = vrcp.f32 %v925_v43  ;;  %v939_v13 = vadd.f32 1.0, %v1746_v26  ;;  %v1061_v14 = vmul.f32 %v2258_v33, %v1060_v42  ;;  %vm1207_vm15 = vcmp.lt.f32.partialorder %v1206_v31, 0.0004427343 }
 0x143   : > { %v1750_v29 = vpop.eup %1749  ;;  %1771 = vrcp.f32 %v941_v0  ;;  %v926_v48 = vadd.f32 1.0, %v1748_v50  ;;  %v1205_v46 = vmul.f32 %v2261_v39, %v1204_v59  ;;  %v832_v44 = vsub.f32 0.0, %v2281_v32 }
 0x144   : > { %v1752_v51 = vpop.eup %1751  ;;  %1773 = vrcp.f32 %v923_v38  ;;  %v942_v20 = vadd.f32 1.0, %v1750_v29  ;;  %v2492_v38 = vld [vmem:[#allocation2_spill] sm:$0xff]  ;;  %v848_v50 = vsub.f32 0.0, %v2287_v15 }
 0x145   : > { %v1754_v37 = vpop.eup %1753  ;;  %1775 = vrcp.f32 %v939_v13  ;;  %v924_v54 = vadd.f32 1.0, %v1752_v51  ;;  %v881_v13 = vmul.f32 1.442695, %v834_v4 }
 0x146   : > { %v1756_v10 = vpop.eup %1755  ;;  %1777 = vrcp.f32 %v926_v48  ;;  %v940_v17 = vadd.f32 1.0, %v1754_v37  ;;  %v2306_v37 = vmul.f32 1.442695, %v832_v44  ;;  %v2308_v5 = vmul.f32 1.442695, %v848_v50 }
 0x147   : > { %v1758_v12 = vpop.eup %1757  ;;  %1779 = vrcp.f32 %v942_v20  ;;  %v929_v11 = vadd.f32 1.0, %v1756_v10 }
 0x148   : > { %v1760_v35 = vpop.eup %1759  ;;  %1781 = vrcp.f32 %v924_v54  ;;  %v945_v45 = vadd.f32 1.0, %v1758_v12 }
 0x149   : > { %1783 = vrcp.f32 %v940_v17  ;;  %v927_v56 = vadd.f32 1.0, %v1760_v35 }
 0x14a   : > { %v1762_v24 = vpop.eup %1761  ;;  %1785 = vrcp.f32 %v929_v11 }
 0x14b   : > { %v1220_v53 = vmul.f32 0.6931472, %v1762_v24  ;;  %v1764_v22 = vpop.eup %1763  ;;  %1787 = vrcp.f32 %v945_v45 }
 0x14c   : > { %1789 = vrcp.f32 %v927_v56 }
 0x14d   : > { %v1766_v36 = vpop.eup %1765  ;;  %v1226_v6 = vsel %vm1225_vm13, %v1223_v27, %v1220_v53 }
 0x14e   : > { %v1768_v3 = vpop.eup %1767  ;;  %v1322_v60 = vmul.f32 %v1226_v6, %v2009_v19  ;;  %v1058_v34 = vmul.f32 0.6931472, %v1766_v36  ;;  %v943_v19 = vadd.f32 1.0, %v1764_v22 }
 0x14f   : > { %v2289_v18 = vpop.eup %1769  ;;  %v1202_v7 = vmul.f32 0.6931472, %v1768_v3 }
 0x150   : > { %v1772_v43 = vpop.eup %1771  ;;  %1354 = vst [vmem:[%s2138_s18 + $0xb8] sm:$0xff] %v1322_v60  ;;  %v1064_v33 = vsel %vm1063_vm14, %v1061_v14, %v1058_v34  ;;  %v1101_v41 = vadd.f32 1.0, %v2289_v18  ;;  %v1104_v51 = vmul.f32 -0.5, %v2289_v18  ;;  %v1107_v17 = vand.u32 2147483647, %v2289_v18 }
 0x151   : > { %v2294_v16 = vpop.eup %1773  ;;  %v1304_v25 = vmul.f32 %v1064_v33, %v2012_v21  ;;  %v1208_v62 = vsel %vm1207_vm15, %v1205_v46, %v1202_v7  ;;  %v1245_v0 = vadd.f32 1.0, %v1772_v43  ;;  %v913_v21 = vmul.f32 1.442695, %v850_v52 }
 0x152   : > { %v1776_v26 = vpop.eup %1775  ;;  %v1320_v39 = vmul.f32 %v1208_v62, %v2492_v38  ;;  %1791 = vlog2.f32 %v1101_v41  ;;  %v1083_v8 = vadd.f32 1.0, %v2294_v16  ;;  %v1248_v20 = vmul.f32 -0.5, %v1772_v43 }
 0x153   : > { %1336 = vst [vmem:[%s2138_s18 + $0x28] sm:$0xff] %v1304_v25  ;;  %1793 = vlog2.f32 %v1245_v0  ;;  %v1778_v1 = vpop.eup %1777  ;;  %v1227_v29 = vadd.f32 1.0, %v1776_v26  ;;  %v1086_v28 = vmul.f32 -0.5, %v2294_v16  ;;  %v1230_v54 = vmul.f32 -0.5, %v1776_v26 }
 0x154   : > { %1352 = vst [vmem:[%s2138_s18 + $0xa8] sm:$0xff] %v1320_v39  ;;  %1795 = vrcp.f32 %v943_v19  ;;  %v2303_v48 = vpop.eup %1779  ;;  %v1110_v10 = vadd.f32 1.0, %v1778_v1  ;;  %v1113_v9 = vmul.f32 -0.5, %v1778_v1  ;;  %v1105_v2 = vadd.f32 1.0, %v1104_v51 }
 0x155   : > { %1797 = vlog2.f32 %v1083_v8  ;;  %v2310_v58 = vpop.eup %1781  ;;  %v1254_v12 = vadd.f32 1.0, %v2303_v48  ;;  %v1249_v35 = vadd.f32 1.0, %v1248_v20  ;;  %v1251_v42 = vand.u32 2147483647, %v1772_v43  ;;  %v2503_v20 = vld [vmem:[#allocation3_spill] sm:$0xff] }
 0x156   : > { %1799 = vlog2.f32 %v1227_v29  ;;  %v2313_v30 = vpop.eup %1783  ;;  %v1089_v23 = vand.u32 2147483647, %v2294_v16  ;;  %v1257_v24 = vmul.f32 -0.5, %v2303_v48  ;;  %v1092_v27 = vadd.f32 1.0, %v2310_v58 }
 0x157   : > { %1801 = vpow2.f32 %v881_v13  ;;  %v2320_v11 = vpop.eup %1785  ;;  %v1087_v53 = vadd.f32 1.0, %v1086_v28  ;;  %v1231_v59 = vadd.f32 1.0, %v1230_v54  ;;  %v1233_v45 = vand.u32 2147483647, %v1776_v26 }
 0x158   : > { %1803 = vpow2.f32 %v913_v21  ;;  %v1236_v22 = vadd.f32 1.0, %v2313_v30  ;;  %v2323_v31 = vpop.eup %1787  ;;  %vm2325_vm0 = vcmp.lt.f32.partialorder %v1107_v17, 0.0004427343  ;;  %v1114_v36 = vadd.f32 1.0, %v1113_v9 }
 0x159   : > { %1805 = vlog2.f32 %v1110_v10  ;;  %v1116_v6 = vand.u32 2147483647, %v1778_v1  ;;  %v1106_v14 = vmul.f32 %v2289_v18, %v1105_v2  ;;  %v1250_v56 = vmul.f32 %v1772_v43, %v1249_v35  ;;  %v2334_v3 = vpop.eup %1789 }
 0x15a   : > { %1807 = vlog2.f32 %v1254_v12  ;;  %vm2330_vm1 = vcmp.lt.f32.partialorder %v1251_v42, 0.0004427343  ;;  %vm2336_vm2 = vcmp.lt.f32.partialorder %v1089_v23, 0.0004427343  ;;  %v1258_v34 = vadd.f32 1.0, %v1257_v24  ;;  %v2504_v12 = vld [vmem:[#allocation4_spill] sm:$0xff] }
 0x15b   : > { %1809 = vlog2.f32 %v1092_v27  ;;  %v1095_v7 = vmul.f32 -0.5, %v2310_v58  ;;  %v1137_v46 = vadd.f32 1.0, %v2320_v11  ;;  %v1088_v18 = vmul.f32 %v2294_v16, %v1087_v53 }
 0x15c   : > { %1811 = vlog2.f32 %v1236_v22  ;;  %v1232_v43 = vmul.f32 %v1776_v26, %v1231_v59  ;;  %vm2343_vm3 = vcmp.lt.f32.partialorder %v1233_v45, 0.0004427343  ;;  %v1281_v19 = vadd.f32 1.0, %v2323_v31  ;;  %v2507_v45 = vld [vmem:[#allocation5_spill] sm:$0xff] }
 0x15d   : > { %v1115_v0 = vmul.f32 %v1778_v1, %v1114_v36  ;;  %vm2348_vm4 = vcmp.lt.f32.partialorder %v1116_v6, 0.0004427343  ;;  %v1260_v39 = vand.u32 2147483647, %v2303_v48  ;;  %1813 = vlog2.f32 %v1137_v46 }
 0x15e   : > { %v1098_v26 = vand.u32 2147483647, %v2310_v58  ;;  %v1239_v50 = vmul.f32 -0.5, %v2313_v30  ;;  %1815 = vlog2.f32 %v1281_v19  ;;  %v1259_v1 = vmul.f32 %v2303_v48, %v1258_v34 }
 0x15f   : > { %v1792_v33 = vpop.eup %1791  ;;  %v1096_v29 = vadd.f32 1.0, %v1095_v7  ;;  %v1119_v21 = vadd.f32 1.0, %v2334_v3  ;;  %v1242_v17 = vand.u32 2147483647, %v2313_v30  ;;  %v1140_v42 = vmul.f32 -0.5, %v2320_v11 }
 0x160   : > { %v1794_v25 = vpop.eup %1793  ;;  %v1103_v62 = vmul.f32 0.6931472, %v1792_v33  ;;  %vm2370_vm5 = vcmp.lt.f32.partialorder %v1260_v39, 0.0004427343  ;;  %v1240_v27 = vadd.f32 1.0, %v1239_v50  ;;  %v1284_v7 = vmul.f32 -0.5, %v2323_v31 }
 0x161   : > { %v2353_v44 = vpop.eup %1795  ;;  %v1247_v16 = vmul.f32 0.6931472, %v1794_v25  ;;  %1817 = vlog2.f32 %v1119_v21  ;;  %vm2379_vm6 = vcmp.lt.f32.partialorder %v1098_v26, 0.0004427343  ;;  %v1143_v6 = vand.u32 2147483647, %v2320_v11 }
 0x162   : > { %v1798_v8 = vpop.eup %1797  ;;  %v1109_v13 = vsel %vm2325_vm0, %v1106_v14, %v1103_v62  ;;  %v1263_v53 = vadd.f32 1.0, %v2353_v44  ;;  %v1097_v34 = vmul.f32 %v2310_v58, %v1096_v29  ;;  %vm2388_vm7 = vcmp.lt.f32.partialorder %v1242_v17, 0.0004427343  ;;  %v2513_v39 = vld [vmem:[#allocation7_spill] sm:$0xff] }
 0x163   : > { %v1800_v51 = vpop.eup %1799  ;;  %v1309_v28 = vmul.f32 %v1109_v13, %v2503_v20  ;;  %v1253_v54 = vsel %vm2330_vm1, %v1250_v56, %v1247_v16  ;;  %v1085_v10 = vmul.f32 0.6931472, %v1798_v8  ;;  %v2510_v56 = vld [vmem:[#allocation6_spill] sm:$0xff]  ;;  %v1241_v19 = vmul.f32 %v2313_v30, %v1240_v27  ;;  %v2514_v13 = vld [vmem:[#allocation8_spill] sm:$0xff] }
 0x164   : > { %v1802_v9 = vpop.eup %1801  ;;  %v1325_v2 = vmul.f32 %v1253_v54, %v2504_v12  ;;  %v1229_v35 = vmul.f32 0.6931472, %v1800_v51  ;;  %1819 = vlog2.f32 %v1263_v53  ;;  %v1122_v8 = vmul.f32 -0.5, %v2334_v3 }
 0x165   : > { %v1804_v48 = vpop.eup %1803  ;;  %1341 = vst [vmem:[%s2138_s18 + $0x50] sm:$0xff] %v1309_v28  ;;  %v1091_v23 = vsel %vm2336_vm2, %v1088_v18, %v1085_v10  ;;  %v1141_v18 = vadd.f32 1.0, %v1140_v42  ;;  %v930_v25 = vadd.f32 1.0, %v1802_v9  ;;  %v1285_v51 = vadd.f32 1.0, %v1284_v7 }
 0x166   : > { %v1806_v59 = vpop.eup %1805  ;;  %1357 = vst [vmem:[%s2138_s18 + $0xd0] sm:$0xff] %v1325_v2  ;;  %v1307_v22 = vmul.f32 %v1091_v23, %v2507_v45  ;;  %v1235_v4 = vsel %vm2343_vm3, %v1232_v43, %v1229_v35  ;;  %v946_v58 = vadd.f32 1.0, %v1804_v48  ;;  %v1287_v38 = vand.u32 2147483647, %v2323_v31 }
 0x167   : > { %v1808_v14 = vpop.eup %1807  ;;  %v1323_v52 = vmul.f32 %v1235_v4, %v2510_v56  ;;  %v1112_v60 = vmul.f32 0.6931472, %v1806_v59  ;;  %1821 = vrcp.f32 %v930_v25  ;;  %v1266_v10 = vmul.f32 -0.5, %v2353_v44 }
 0x168   : > { %1339 = vst [vmem:[%s2138_s18 + $0x40] sm:$0xff] %v1307_v22  ;;  %v1256_v46 = vmul.f32 0.6931472, %v1808_v14  ;;  %v1810_v43 = vpop.eup %1809  ;;  %1823 = vrcp.f32 %v946_v58  ;;  %vm1144_vm8 = vcmp.lt.f32.partialorder %v1143_v6, 0.0004427343  ;;  %v1286_v35 = vmul.f32 %v2323_v31, %v1285_v51 }
 0x169   : > { %1355 = vst [vmem:[%s2138_s18 + $0xc0] sm:$0xff] %v1323_v52  ;;  %v1118_v41 = vsel %vm2348_vm4, %v1115_v0, %v1112_v60  ;;  %v1812_v62 = vpop.eup %1811  ;;  %v1094_v50 = vmul.f32 0.6931472, %v1810_v43  ;;  %v1142_v0 = vmul.f32 %v2320_v11, %v1141_v18  ;;  %1825 = vpow2.f32 %v2306_v37 }
 0x16a   : > { %v1310_v16 = vmul.f32 %v1118_v41, %v2513_v39  ;;  %v1262_v26 = vsel %vm2370_vm5, %v1259_v1, %v1256_v46  ;;  %v1238_v21 = vmul.f32 0.6931472, %v1812_v62  ;;  %v1814_v20 = vpop.eup %1813  ;;  %v2515_v1 = vld [vmem:[#allocation9_spill] sm:$0xff]  ;;  %v1123_v11 = vadd.f32 1.0, %v1122_v8 }
 0x16b   : > { %v1326_v29 = vmul.f32 %v1262_v26, %v2514_v13  ;;  %v1100_v30 = vsel %vm2379_vm6, %v1097_v34, %v1094_v50  ;;  %v1816_v17 = vpop.eup %1815  ;;  %v1139_v12 = vmul.f32 0.6931472, %v1814_v20  ;;  %1827 = vpow2.f32 %v2308_v5 }
 0x16c   : > { %1342 = vst [vmem:[%s2138_s18 + $0x58] sm:$0xff] %v1310_v16  ;;  %v1308_v28 = vmul.f32 %v1100_v30, %v2515_v1  ;;  %v1244_v54 = vsel %vm2388_vm7, %v1241_v19, %v1238_v21  ;;  %v1283_v2 = vmul.f32 0.6931472, %v1816_v17  ;;  %v1125_v42 = vand.u32 2147483647, %v2334_v3 }
 0x16d   : > { %1358 = vst [vmem:[%s2138_s18 + $0xd8] sm:$0xff] %v1326_v29  ;;  %v1324_v9 = vmul.f32 %v1244_v54, %v2059_v40  ;;  %v1145_v48 = vsel %vm1144_vm8, %v1142_v0, %v1139_v12  ;;  %vm1288_vm9 = vcmp.lt.f32.partialorder %v1287_v38, 0.0004427343  ;;  %v1124_v27 = vmul.f32 %v2334_v3, %v1123_v11 }
 0x16e   : > { %1340 = vst [vmem:[%s2138_s18 + $0x48] sm:$0xff] %v1308_v28  ;;  %v1818_v37 = vpop.eup %1817  ;;  %v1313_v40 = vmul.f32 %v1145_v48, %v2064_v57  ;;  %v1289_v23 = vsel %vm1288_vm9, %v1286_v35, %v1283_v2  ;;  %v1267_v53 = vadd.f32 1.0, %v1266_v10  ;;  %vm1126_vm10 = vcmp.lt.f32.partialorder %v1125_v42, 0.0004427343 }
 0x16f   : > { %1356 = vst [vmem:[%s2138_s18 + $0xc8] sm:$0xff] %v1324_v9  ;;  %v1329_v24 = vmul.f32 %v1289_v23, %v2069_v61  ;;  %v1121_v5 = vmul.f32 0.6931472, %v1818_v37  ;;  %v1269_v31 = vand.u32 2147483647, %v2353_v44 }
 0x170   : > { %1345 = vst [vmem:[%s2138_s18 + $0x70] sm:$0xff] %v1313_v40  ;;  %v1268_v57 = vmul.f32 %v2353_v44, %v1267_v53 }
 0x171   : > { %1361 = vst [vmem:[%s2138_s18 + $0xf0] sm:$0xff] %v1329_v24  ;;  %v1127_v59 = vsel %vm1126_vm10, %v1124_v27, %v1121_v5  ;;  %v1820_v45 = vpop.eup %1819  ;;  %vm1270_vm11 = vcmp.lt.f32.partialorder %v1269_v31, 0.0004427343 }
 0x172   : > { %v1311_v22 = vmul.f32 %v1127_v59, %v2232_v47  ;;  %v1265_v4 = vmul.f32 0.6931472, %v1820_v45 }
 0x174   : > { %1343 = vst [vmem:[%s2138_s18 + $0x60] sm:$0xff] %v1311_v22  ;;  %v1822_v61 = vpop.eup %1821  ;;  %v1271_v36 = vsel %vm1270_vm11, %v1268_v57, %v1265_v4 }
 0x175   : > { %v1824_v6 = vpop.eup %1823  ;;  %v1327_v3 = vmul.f32 %v1271_v36, %v2235_v49  ;;  %v1146_v14 = vadd.f32 1.0, %v1822_v61  ;;  %v1149_v47 = vmul.f32 -0.5, %v1822_v61  ;;  %v1152_v33 = vand.u32 2147483647, %v1822_v61 }
 0x176   : > { %v1826_v56 = vpop.eup %1825  ;;  %v1290_v52 = vadd.f32 1.0, %v1824_v6  ;;  %v1293_v44 = vmul.f32 -0.5, %v1824_v6  ;;  %v1296_v43 = vand.u32 2147483647, %v1824_v6 }
 0x177   : > { %1359 = vst [vmem:[%s2138_s18 + $0xe0] sm:$0xff] %v1327_v3  ;;  %1829 = vlog2.f32 %v1146_v14  ;;  %v928_v34 = vadd.f32 1.0, %v1826_v56  ;;  %v1150_v46 = vadd.f32 1.0, %v1149_v47  ;;  %vm1153_vm12 = vcmp.lt.f32.partialorder %v1152_v33, 0.0004427343 }
 0x178   : > { %v1828_v60 = vpop.eup %1827  ;;  %1831 = vlog2.f32 %v1290_v52  ;;  %v1294_v18 = vadd.f32 1.0, %v1293_v44  ;;  %vm1297_vm13 = vcmp.lt.f32.partialorder %v1296_v43, 0.0004427343 }
 0x179   : > { %v944_v7 = vadd.f32 1.0, %v1828_v60  ;;  %1833 = vrcp.f32 %v928_v34  ;;  %v1151_v25 = vmul.f32 %v1822_v61, %v1150_v46 }
 0x17a   : > { %v1295_v39 = vmul.f32 %v1824_v6, %v1294_v18 }
 0x17b   : > { %1835 = vrcp.f32 %v944_v7 }
 0x184   : > { %v1830_v41 = vpop.eup %1829 }
 0x185   : > { %v1832_v19 = vpop.eup %1831  ;;  %v1148_v49 = vmul.f32 0.6931472, %v1830_v41 }
 0x186   : > { %v1834_v58 = vpop.eup %1833  ;;  %v1292_v62 = vmul.f32 0.6931472, %v1832_v19 }
 0x187   : > { %v1154_v26 = vsel %vm1153_vm12, %v1151_v25, %v1148_v49  ;;  %v1128_v50 = vadd.f32 1.0, %v1834_v58  ;;  %v1131_v51 = vmul.f32 -0.5, %v1834_v58  ;;  %v1134_v38 = vand.u32 2147483647, %v1834_v58 }
 0x188   : > { %v1836_v16 = vpop.eup %1835  ;;  %v1314_v8 = vmul.f32 %v1154_v26, %v2271_v55  ;;  %v1298_v13 = vsel %vm1297_vm13, %v1295_v39, %v1292_v62 }
 0x189   : > { %v1272_v29 = vadd.f32 1.0, %v1836_v16  ;;  %v1330_v21 = vmul.f32 %v1298_v13, %v2275_v63  ;;  %1837 = vlog2.f32 %v1128_v50  ;;  %v1275_v30 = vmul.f32 -0.5, %v1836_v16 }
 0x18a   : > { %1346 = vst [vmem:[%s2138_s18 + $0x78] sm:$0xff] %v1314_v8  ;;  %v1132_v0 = vadd.f32 1.0, %v1131_v51  ;;  %v1278_v1 = vand.u32 2147483647, %v1836_v16  ;;  %vm1135_vm14 = vcmp.lt.f32.partialorder %v1134_v38, 0.0004427343 }
 0x18b   : > { %1839 = vlog2.f32 %v1272_v29  ;;  %1362 = vst [vmem:[%s2138_s18 + $0xf8] sm:$0xff] %v1330_v21  ;;  %v1276_v20 = vadd.f32 1.0, %v1275_v30 }
 0x18c   : > { %v1133_v55 = vmul.f32 %v1834_v58, %v1132_v0  ;;  %vm1279_vm15 = vcmp.lt.f32.partialorder %v1278_v1, 0.0004427343 }
 0x18d   : > { %v1277_v9 = vmul.f32 %v1836_v16, %v1276_v20 }
 0x196   : > { %v1838_v28 = vpop.eup %1837 }
 0x197   : > { %v1130_v10 = vmul.f32 0.6931472, %v1838_v28 }
 0x198   : > { %v1840_v54 = vpop.eup %1839 }
 0x199   : > { %v1274_v17 = vmul.f32 0.6931472, %v1840_v54  ;;  %v1136_v63 = vsel %vm1135_vm14, %v1133_v55, %v1130_v10 }
 0x19a   : > { %v1312_v12 = vmul.f32 %v1136_v63, %v2281_v32 }
 0x19b   : > { %v1280_v11 = vsel %vm1279_vm15, %v1277_v9, %v1274_v17 }
 0x19c   : > { %v1328_v2 = vmul.f32 %v1280_v11, %v2287_v15  ;;  %1344 = vst [vmem:[%s2138_s18 + $0x68] sm:$0xff] %v1312_v12 }
 0x19e   : > { %1360 = vst [vmem:[%s2138_s18 + $0xe8] sm:$0xff] %v1328_v2 }
 0x19f PF: > { %s13_s14 = sadd.s32 1, %s1863_s14   ;;  %s2516_s12 = smov %s1859_s13 }
 0x1a0   : > { %p10_p5 = scmp.ge.s32.totalorder %s13_s14, 4   ;;  %s2517_s13 = smov %s2519_s15 }
 0x1a2   :  { %12 = sbr.rel (!%p10_p5) target bundleno = 2 (0x2), region = 76 }

// kernel: bottleneck_logish_forward.4
= control target key start
LH: loop header
LB: loop body
LE: loop exit
PB: predicated region body
PF: predicated region fallthrough
CT: control target
= control target key end

     0   :  { %s1335_s1 = inlined_call_operand.vmem [shape: bf16[256,128], index: 1, kind: input, shape index: {}]   ;;  %s1336_s0 = inlined_call_operand.vmem [shape: bf16[128,256], index: 0, kind: input, shape index: {}]   ;;  %s1337_s2 = inlined_call_operand.vmem [shape: f32[1,128], index: 2, kind: input, shape index: {}]   ;;  %s1338_s3 = inlined_call_operand.vmem [shape: f32[128,128], index: 3, kind: output, shape index: {}]  }
   0x1   :  { %v836_v0 = vld [vmem:[%s1335_s1 + $0x78] sm:$0xff]   ;;  %v838_v2 = vld [vmem:[%s1335_s1 + $0x70] sm:$0xff]   ;;  %v840_v4 = vld [vmem:[%s1335_s1 + $0x68] sm:$0xff]  }
   0x2   :  { %v837_v1 = vld [vmem:[%s1335_s1 + $0x38] sm:$0xff]   ;;  %755 = vmatprep.subr.bf16.mxu0 %v836_v0  ;;  %819 = vmatprep.subr.bf16.mxu1 %v836_v0  ;;  %v839_v3 = vld [vmem:[%s1335_s1 + $0x30] sm:$0xff]   ;;  %v841_v5 = vld [vmem:[%s1335_s1 + $0x28] sm:$0xff]  }
   0x3   :  { %756 = vmatpush3.bf16.msra.mxu0 %v837_v1  ;;  %827 = vmatpush3.bf16.msra.mxu1 %v837_v1  ;;  %v842_v6 = vld [vmem:[%s1335_s1 + $0x60] sm:$0xff]   ;;  %v844_v8 = vld [vmem:[%s1335_s1 + $0x58] sm:$0xff]   ;;  %v846_v10 = vld [vmem:[%s1335_s1 + $0x50] sm:$0xff]  }
   0x4   :  { %757 = vmatprep.subr.bf16.mxu0 %v838_v2  ;;  %820 = vmatprep.subr.bf16.mxu1 %v838_v2  ;;  %v843_v7 = vld [vmem:[%s1335_s1 + $0x20] sm:$0xff]   ;;  %v845_v9 = vld [vmem:[%s1335_s1 + $0x18] sm:$0xff]   ;;  %v847_v13 = vld [vmem:[%s1335_s1 + $0x10] sm:$0xff]  }
   0x5   :  { %v854_v11 = vld [vmem:[%s1336_s0 + $0x4] ss:$8 sps:$4 sm:$0xff]   ;;  %v852_v18 = vld [vmem:[%s1336_s0] ss:$8 sps:$4 sm:$0xff]   ;;  %v858_v20 = vld [vmem:[%s1336_s0 + $0x14] ss:$8 sps:$4 sm:$0xff]  }
   0x6   :  { %v857_v12 = vld [vmem:[%s1336_s0 + $0x44] ss:$8 sps:$4 sm:$0xff]   ;;  %307 = vmatprep.mubr.bf16.mxu0 %v854_v11  ;;  %v855_v19 = vld [vmem:[%s1336_s0 + $0x40] ss:$8 sps:$4 sm:$0xff]   ;;  %v860_v21 = vld [vmem:[%s1336_s0 + $0x54] ss:$8 sps:$4 sm:$0xff]  }
   0x7   :  { %758 = vmatpush3.bf16.msra.mxu0 %v839_v3  ;;  %828 = vmatpush3.bf16.msra.mxu1 %v839_v3  ;;  %v848_v14 = vld [vmem:[%s1335_s1 + $0x48] sm:$0xff]   ;;  %v850_v16 = vld [vmem:[%s1335_s1 + $0x40] sm:$0xff]   ;;  %v862_v22 = vld [vmem:[%s1336_s0 + $0x10] ss:$8 sps:$4 sm:$0xff]  }
   0x8   :  { %759 = vmatprep.subr.bf16.mxu0 %v840_v4  ;;  %821 = vmatprep.subr.bf16.mxu1 %v840_v4  ;;  %v849_v15 = vld [vmem:[%s1335_s1 + $0x8] sm:$0xff]   ;;  %v851_v17 = vld [vmem:[%s1335_s1] sm:$0xff]   ;;  %v863_v23 = vld [vmem:[%s1336_s0 + $0x50] ss:$8 sps:$4 sm:$0xff]  }
   0x9   :  { %339 = vmatprep.mubr.bf16.mxu1 %v857_v12  ;;  %v864_v24 = vld [vmem:[%s1336_s0 + $0x24] ss:$8 sps:$4 sm:$0xff]   ;;  %v868_v26 = vld [vmem:[%s1336_s0 + $0x20] ss:$8 sps:$4 sm:$0xff]   ;;  %v870_v28 = vld [vmem:[%s1336_s0 + $0x34] ss:$8 sps:$4 sm:$0xff]  }
   0xa   :  { %v866_v25 = vld [vmem:[%s1336_s0 + $0x64] ss:$8 sps:$4 sm:$0xff]   ;;  %v869_v27 = vld [vmem:[%s1336_s0 + $0x60] ss:$8 sps:$4 sm:$0xff]   ;;  %v872_v29 = vld [vmem:[%s1336_s0 + $0x74] ss:$8 sps:$4 sm:$0xff]  }
   0xb   :  { %760 = vmatpush3.bf16.msra.mxu0 %v841_v5  ;;  %829 = vmatpush3.bf16.msra.mxu1 %v841_v5  ;;  %v874_v30 = vld [vmem:[%s1336_s0 + $0x30] ss:$8 sps:$4 sm:$0xff]   ;;  %v1091_v38 = vld [vmem:[%s1337_s2] ss:$0 sm:$0xff] }
   0xc   :  { %761 = vmatprep.subr.bf16.mxu0 %v842_v6  ;;  %822 = vmatprep.subr.bf16.mxu1 %v842_v6  ;;  %v875_v31 = vld [vmem:[%s1336_s0 + $0x70] ss:$8 sps:$4 sm:$0xff]  }
   0xf   :  { %762 = vmatpush3.bf16.msra.mxu0 %v843_v7  ;;  %830 = vmatpush3.bf16.msra.mxu1 %v843_v7 }
  0x10   :  { %763 = vmatprep.subr.bf16.mxu0 %v844_v8  ;;  %823 = vmatprep.subr.bf16.mxu1 %v844_v8 }
  0x13   :  { %764 = vmatpush3.bf16.msra.mxu0 %v845_v9  ;;  %831 = vmatpush3.bf16.msra.mxu1 %v845_v9 }
  0x14   :  { %765 = vmatprep.subr.bf16.mxu0 %v846_v10  ;;  %824 = vmatprep.subr.bf16.mxu1 %v846_v10 }
  0x17   :  { %766 = vmatpush3.bf16.msra.mxu0 %v847_v13  ;;  %832 = vmatpush3.bf16.msra.mxu1 %v847_v13 }
  0x18   :  { %767 = vmatprep.subr.bf16.mxu0 %v848_v14  ;;  %825 = vmatprep.subr.bf16.mxu1 %v848_v14 }
  0x1b   :  { %768 = vmatpush3.bf16.msra.mxu0 %v849_v15  ;;  %833 = vmatpush3.bf16.msra.mxu1 %v849_v15 }
  0x1c   :  { %769 = vmatprep.subr.bf16.mxu0 %v850_v16  ;;  %826 = vmatprep.subr.bf16.mxu1 %v850_v16 }
  0x1f   :  { %770 = vmatpush3.bf16.msra.mxu0 %v851_v17  ;;  %834 = vmatpush3.bf16.msra.mxu1 %v851_v17 }
  0x22   :  { %308 = vmatmul.mubr.bf16.vlgmr.msra.gmra.mxu0 %v852_v18  ;;  %340 = vmatmul.mubr.bf16.vlgmr.msra.gmra.mxu1 %v855_v19 }
  0x23   :  { %315 = vmatprep.mubr.bf16.mxu0 %v858_v20  ;;  %347 = vmatprep.mubr.bf16.mxu1 %v860_v21 }
  0x2a   :  { %316 = vmatmul.mubr.bf16.gmra.mxu0 %v862_v22  ;;  %348 = vmatmul.mubr.bf16.gmra.mxu1 %v863_v23 }
  0x2b   :  { %323 = vmatprep.mubr.bf16.mxu0 %v864_v24  ;;  %355 = vmatprep.mubr.bf16.mxu1 %v866_v25 }
  0x32   :  { %324 = vmatmul.mubr.bf16.gmra.mxu0 %v868_v26  ;;  %356 = vmatmul.mubr.bf16.gmra.mxu1 %v869_v27 }
  0x33   :  { %331 = vmatprep.mubr.bf16.mxu0 %v870_v28  ;;  %363 = vmatprep.mubr.bf16.mxu1 %v872_v29 }
  0x3a   :  { %332 = vmatmul.mubr.bf16.gmra.mxu0 %v874_v30  ;;  %364 = vmatmul.mubr.bf16.gmra.mxu1 %v875_v31 }
  0xe2   :  { %v771_v32 = vpop.f32.mrf.mxu0  ;;  %v795_v33 = vpop.f32.mrf.mxu1 }
  0xe4   :  { %v772_v34 = vpop.f32.mrf.mxu0  ;;  %v796_v35 = vpop.f32.mrf.mxu1 }
  0xe5   :  { %v773_v36 = vadd.f32 %v772_v34, %v771_v32  ;;  %v797_v37 = vadd.f32 %v796_v35, %v795_v33 }
  0xe6   :  { %v774_v39 = vpop.f32.mrf.mxu0  ;;  %v798_v40 = vpop.f32.mrf.mxu1 }
  0xe7   :  { %v1094_v43 = vadd.f32 %v773_v36, %v1091_v38  ;;  %v1097_v44 = vadd.f32 %v797_v37, %v1091_v38 }
  0xe8   :  { %v775_v41 = vpop.f32.mrf.mxu0  ;;  %v799_v42 = vpop.f32.mrf.mxu1 }
  0xe9   :  { %v776_v45 = vadd.f32 %v775_v41, %v774_v39  ;;  %v800_v46 = vadd.f32 %v799_v42, %v798_v40  ;;  %v446_v49 = vsub.f32 0.0, %v1094_v43  ;;  %v454_v50 = vsub.f32 0.0, %v1097_v44 }
  0xea   :  { %v777_v47 = vpop.f32.mrf.mxu0  ;;  %v801_v48 = vpop.f32.mrf.mxu1 }
  0xeb   :  { %v462_v53 = vmul.f32 1.442695, %v446_v49  ;;  %v478_v54 = vmul.f32 1.442695, %v454_v50  ;;  %v1102_v55 = vadd.f32 %v776_v45, %v1091_v38  ;;  %v1105_v56 = vadd.f32 %v800_v46, %v1091_v38 }
  0xec   :  { %v778_v51 = vpop.f32.mrf.mxu0  ;;  %v802_v52 = vpop.f32.mrf.mxu1 }
  0xed   :  { %v779_v57 = vadd.f32 %v778_v51, %v777_v47  ;;  %v803_v58 = vadd.f32 %v802_v52, %v801_v48  ;;  %876 = vpow2.f32 %v462_v53  ;;  %v447_v61 = vsub.f32 0.0, %v1102_v55 }
  0xee   :  { %v780_v59 = vpop.f32.mrf.mxu0  ;;  %v804_v60 = vpop.f32.mrf.mxu1  ;;  %v455_v62 = vsub.f32 0.0, %v1105_v56  ;;  %878 = vpow2.f32 %v478_v54 }
  0xef   :  { %v464_v1 = vmul.f32 1.442695, %v447_v61  ;;  %v1110_v5 = vadd.f32 %v779_v57, %v1091_v38  ;;  %v1113_v6 = vadd.f32 %v803_v58, %v1091_v38 }
  0xf0   :  { %v781_v63 = vpop.f32.mrf.mxu0  ;;  %v805_v0 = vpop.f32.mrf.mxu1  ;;  %v480_v2 = vmul.f32 1.442695, %v455_v62 }
  0xf1   :  { %v782_v3 = vadd.f32 %v781_v63, %v780_v59  ;;  %v806_v4 = vadd.f32 %v805_v0, %v804_v60  ;;  %880 = vpow2.f32 %v464_v1  ;;  %v448_v9 = vsub.f32 0.0, %v1110_v5 }
  0xf2   :  { %v783_v7 = vpop.f32.mrf.mxu0  ;;  %v807_v8 = vpop.f32.mrf.mxu1  ;;  %882 = vpow2.f32 %v480_v2  ;;  %v456_v10 = vsub.f32 0.0, %v1113_v6 }
  0xf3   :  { %v1118_v13 = vadd.f32 %v782_v3, %v1091_v38  ;;  %v1121_v14 = vadd.f32 %v806_v4, %v1091_v38  ;;  %v466_v17 = vmul.f32 1.442695, %v448_v9 }
  0xf4   :  { %v784_v11 = vpop.f32.mrf.mxu0  ;;  %v808_v12 = vpop.f32.mrf.mxu1  ;;  %v482_v18 = vmul.f32 1.442695, %v456_v10 }
  0xf5   :  { %v785_v15 = vadd.f32 %v784_v11, %v783_v7  ;;  %v809_v16 = vadd.f32 %v808_v12, %v807_v8  ;;  %v449_v21 = vsub.f32 0.0, %v1118_v13  ;;  %v457_v22 = vsub.f32 0.0, %v1121_v14 }
  0xf6   :  { %v786_v19 = vpop.f32.mrf.mxu0  ;;  %v810_v20 = vpop.f32.mrf.mxu1  ;;  %884 = vpow2.f32 %v466_v17 }
  0xf7   :  { %886 = vpow2.f32 %v482_v18  ;;  %v468_v25 = vmul.f32 1.442695, %v449_v21  ;;  %v484_v26 = vmul.f32 1.442695, %v457_v22  ;;  %v1126_v27 = vadd.f32 %v785_v15, %v1091_v38 }
  0xf8   :  { %v787_v23 = vpop.f32.mrf.mxu0  ;;  %v811_v24 = vpop.f32.mrf.mxu1  ;;  %v1129_v28 = vadd.f32 %v809_v16, %v1091_v38 }
  0xf9   :  { %v788_v29 = vadd.f32 %v787_v23, %v786_v19  ;;  %v812_v30 = vadd.f32 %v811_v24, %v810_v20  ;;  %888 = vpow2.f32 %v468_v25  ;;  %v450_v33 = vsub.f32 0.0, %v1126_v27 }
  0xfa   :  { %v789_v31 = vpop.f32.mrf.mxu0  ;;  %v813_v32 = vpop.f32.mrf.mxu1  ;;  %890 = vpow2.f32 %v484_v26  ;;  %v458_v35 = vsub.f32 0.0, %v1129_v28 }
  0xfb   :  { %v877_v34 = vpop.eup %876  ;;  %v470_v41 = vmul.f32 1.442695, %v450_v33  ;;  %v1134_v48 = vadd.f32 %v788_v29, %v1091_v38  ;;  %v1137_v49 = vadd.f32 %v812_v30, %v1091_v38 }
  0xfc   :  { %v790_v36 = vpop.f32.mrf.mxu0  ;;  %v814_v37 = vpop.f32.mrf.mxu1  ;;  %v494_v40 = vadd.f32 1.0, %v877_v34  ;;  %v486_v47 = vmul.f32 1.442695, %v458_v35 }
  0xfd   :  { %v879_v39 = vpop.eup %878  ;;  %v791_v42 = vadd.f32 %v790_v36, %v789_v31  ;;  %v815_v45 = vadd.f32 %v814_v37, %v813_v32  ;;  %v451_v53 = vsub.f32 0.0, %v1134_v48  ;;  %v459_v54 = vsub.f32 0.0, %v1137_v49 }
  0xfe   :  { %v502_v46 = vadd.f32 1.0, %v879_v39  ;;  %v792_v50 = vpop.f32.mrf.mxu0  ;;  %v816_v51 = vpop.f32.mrf.mxu1  ;;  %892 = vrcp.f32 %v494_v40 }
  0xff   :  { %v881_v52 = vpop.eup %880  ;;  %v1142_v60 = vadd.f32 %v791_v42, %v1091_v38  ;;  %v1145_v61 = vadd.f32 %v815_v45, %v1091_v38  ;;  %v472_v0 = vmul.f32 1.442695, %v451_v53  ;;  %v488_v1 = vmul.f32 1.442695, %v459_v54 }
 0x100   :  { %894 = vrcp.f32 %v502_v46  ;;  %v793_v57 = vpop.f32.mrf.mxu0  ;;  %v883_v58 = vpop.eup %882  ;;  %v495_v59 = vadd.f32 1.0, %v881_v52 }
 0x101   :  { %896 = vpow2.f32 %v470_v41  ;;  %v817_v62 = vpop.f32.mrf.mxu1  ;;  %v503_v63 = vadd.f32 1.0, %v883_v58  ;;  %v452_v2 = vsub.f32 0.0, %v1142_v60  ;;  %v460_v3 = vsub.f32 0.0, %v1145_v61 }
 0x102   :  { %898 = vpow2.f32 %v486_v47  ;;  %v794_v4 = vadd.f32 %v793_v57, %v792_v50  ;;  %v818_v7 = vadd.f32 %v817_v62, %v816_v51 }
 0x103   :  { %900 = vrcp.f32 %v495_v59  ;;  %v885_v8 = vpop.eup %884  ;;  %v474_v9 = vmul.f32 1.442695, %v452_v2  ;;  %v490_v12 = vmul.f32 1.442695, %v460_v3 }
 0x104   :  { %902 = vrcp.f32 %v503_v63  ;;  %v887_v10 = vpop.eup %886  ;;  %v496_v11 = vadd.f32 1.0, %v885_v8  ;;  %v1150_v16 = vadd.f32 %v794_v4, %v1091_v38  ;;  %v1153_v18 = vadd.f32 %v818_v7, %v1091_v38 }
 0x105   :  { %904 = vpow2.f32 %v472_v0  ;;  %v504_v15 = vadd.f32 1.0, %v887_v10 }
 0x106   :  { %906 = vpow2.f32 %v488_v1  ;;  %v889_v17 = vpop.eup %888  ;;  %v453_v21 = vsub.f32 0.0, %v1150_v16  ;;  %v461_v23 = vsub.f32 0.0, %v1153_v18 }
 0x107   :  { %908 = vpow2.f32 %v474_v9  ;;  %v891_v19 = vpop.eup %890  ;;  %v497_v20 = vadd.f32 1.0, %v889_v17 }
 0x108   :  { %910 = vrcp.f32 %v496_v11  ;;  %v505_v22 = vadd.f32 1.0, %v891_v19  ;;  %v476_v24 = vmul.f32 1.442695, %v453_v21  ;;  %v492_v26 = vmul.f32 1.442695, %v461_v23 }
 0x109   :  { %912 = vrcp.f32 %v504_v15 }
 0x10a   :  { %914 = vpow2.f32 %v490_v12 }
 0x10b   :  { %916 = vrcp.f32 %v497_v20  ;;  %v893_v25 = vpop.eup %892 }
 0x10c   :  { %918 = vrcp.f32 %v505_v22  ;;  %v542_v30 = vadd.f32 1.0, %v893_v25  ;;  %v545_v41 = vmul.f32 -0.5, %v893_v25  ;;  %v548_v47 = vand.u32 2147483647, %v893_v25 }
 0x10d   :  { %v895_v29 = vpop.eup %894  ;;  %920 = vpow2.f32 %v476_v24 }
 0x10e   :  { %v897_v31 = vpop.eup %896  ;;  %v614_v38 = vadd.f32 1.0, %v895_v29  ;;  %922 = vpow2.f32 %v492_v26  ;;  %v617_v42 = vmul.f32 -0.5, %v895_v29  ;;  %v620_v52 = vand.u32 2147483647, %v895_v29 }
 0x10f   :  { %v899_v32 = vpop.eup %898  ;;  %924 = vlog2.f32 %v542_v30  ;;  %v498_v36 = vadd.f32 1.0, %v897_v31  ;;  %v546_v58 = vadd.f32 1.0, %v545_v41  ;;  %vm1168_vm0 = vcmp.lt.f32.partialorder %v548_v47, 0.0004427343 }
 0x110   :  { %v901_v33 = vpop.eup %900  ;;  %926 = vlog2.f32 %v614_v38  ;;  %v506_v45 = vadd.f32 1.0, %v899_v32  ;;  %v618_v59 = vadd.f32 1.0, %v617_v42  ;;  %vm1177_vm1 = vcmp.lt.f32.partialorder %v620_v52, 0.0004427343 }
 0x111   :  { %v1157_v34 = vpop.eup %902  ;;  %v551_v35 = vadd.f32 1.0, %v901_v33  ;;  %v554_v53 = vmul.f32 -0.5, %v901_v33  ;;  %v557_v1 = vand.u32 2147483647, %v901_v33  ;;  %v547_v19 = vmul.f32 %v893_v25, %v546_v58 }
 0x112   :  { %v905_v37 = vpop.eup %904  ;;  %v623_v39 = vadd.f32 1.0, %v1157_v34  ;;  %v626_v2 = vmul.f32 -0.5, %v1157_v34  ;;  %v629_v4 = vand.u32 2147483647, %v1157_v34  ;;  %v619_v20 = vmul.f32 %v895_v29, %v618_v59 }
 0x113   :  { %v907_v40 = vpop.eup %906  ;;  %928 = vlog2.f32 %v551_v35  ;;  %v499_v8 = vadd.f32 1.0, %v905_v37  ;;  %v555_v11 = vadd.f32 1.0, %v554_v53  ;;  %vm1182_vm2 = vcmp.lt.f32.partialorder %v557_v1, 0.0004427343 }
 0x114   :  { %v909_v46 = vpop.eup %908  ;;  %930 = vlog2.f32 %v623_v39  ;;  %v507_v15 = vadd.f32 1.0, %v907_v40  ;;  %v627_v24 = vadd.f32 1.0, %v626_v2  ;;  %vm1186_vm3 = vcmp.lt.f32.partialorder %v629_v4, 0.0004427343 }
 0x115   :  { %v1160_v50 = vpop.eup %910  ;;  %932 = vrcp.f32 %v498_v36  ;;  %v500_v21 = vadd.f32 1.0, %v909_v46  ;;  %v556_v29 = vmul.f32 %v901_v33, %v555_v11 }
 0x116   :  { %v1162_v51 = vpop.eup %912  ;;  %v560_v54 = vadd.f32 1.0, %v1160_v50  ;;  %934 = vrcp.f32 %v506_v45  ;;  %v563_v32 = vmul.f32 -0.5, %v1160_v50  ;;  %v628_v45 = vmul.f32 %v1157_v34, %v627_v24 }
 0x117   :  { %v915_v57 = vpop.eup %914  ;;  %v632_v62 = vadd.f32 1.0, %v1162_v51  ;;  %v635_v37 = vmul.f32 -0.5, %v1162_v51  ;;  %v638_v2 = vand.u32 2147483647, %v1162_v51 }
 0x118   :  { %v1166_v63 = vpop.eup %916  ;;  %936 = vlog2.f32 %v560_v54  ;;  %v508_v26 = vadd.f32 1.0, %v915_v57  ;;  %v564_v52 = vadd.f32 1.0, %v563_v32  ;;  %v566_v57 = vand.u32 2147483647, %v1160_v50 }
 0x119   :  { %v1173_v3 = vpop.eup %918  ;;  %938 = vlog2.f32 %v632_v62  ;;  %v569_v7 = vadd.f32 1.0, %v1166_v63  ;;  %v572_v53 = vmul.f32 -0.5, %v1166_v63  ;;  %v636_v34 = vadd.f32 1.0, %v635_v37 }
 0x11a   :  { %v921_v9 = vpop.eup %920  ;;  %v641_v12 = vadd.f32 1.0, %v1173_v3  ;;  %v644_v58 = vmul.f32 -0.5, %v1173_v3  ;;  %vm567_vm4 = vcmp.lt.f32.partialorder %v566_v57, 0.0004427343  ;;  %vm639_vm5 = vcmp.lt.f32.partialorder %v638_v2, 0.0004427343 }
 0x11b   :  { %v923_v17 = vpop.eup %922  ;;  %940 = vlog2.f32 %v569_v7  ;;  %v501_v35 = vadd.f32 1.0, %v921_v9  ;;  %v573_v9 = vadd.f32 1.0, %v572_v53 }
 0x11c   :  { %v925_v22 = vpop.eup %924  ;;  %942 = vlog2.f32 %v641_v12  ;;  %v509_v39 = vadd.f32 1.0, %v923_v17  ;;  %v645_v12 = vadd.f32 1.0, %v644_v58  ;;  %v647_v17 = vand.u32 2147483647, %v1173_v3 }
 0x11d   :  { %v927_v30 = vpop.eup %926  ;;  %v544_v31 = vmul.f32 0.6931472, %v925_v22  ;;  %944 = vrcp.f32 %v499_v8  ;;  %v565_v8 = vmul.f32 %v1160_v50, %v564_v52  ;;  %v637_v50 = vmul.f32 %v1162_v51, %v636_v34 }
 0x11e   :  { %v616_v25 = vmul.f32 0.6931472, %v927_v30  ;;  %946 = vrcp.f32 %v507_v15  ;;  %v646_v51 = vmul.f32 %v1173_v3, %v645_v12  ;;  %vm648_vm7 = vcmp.lt.f32.partialorder %v647_v17, 0.0004427343 }
 0x11f   :  { %v550_v36 = vsel %vm1168_vm0, %v547_v19, %v544_v31  ;;  %948 = vrcp.f32 %v500_v21 }
 0x120   :  { %v929_v40 = vpop.eup %928  ;;  %v686_v41 = vmul.f32 %v550_v36, %v1094_v43  ;;  %v622_v42 = vsel %vm1177_vm1, %v619_v20, %v616_v25  ;;  %950 = vrcp.f32 %v508_v26  ;;  %v574_v26 = vmul.f32 %v1166_v63, %v573_v9 }
 0x121   :  { %v931_v46 = vpop.eup %930  ;;  %v694_v33 = vmul.f32 %v622_v42, %v1097_v44  ;;  %v553_v47 = vmul.f32 0.6931472, %v929_v40  ;;  %952 = vrcp.f32 %v501_v35 }
 0x122   :  { %v1200_v54 = vpop.eup %932  ;;  %702 = vst [vmem:[%s1338_s3] sm:$0xff] %v686_v41  ;;  %v625_v43 = vmul.f32 0.6931472, %v931_v46  ;;  %954 = vrcp.f32 %v509_v39 }
 0x123   :  { %710 = vst [vmem:[%s1338_s3 + $0x40] sm:$0xff] %v694_v33  ;;  %v559_v44 = vsel %vm1182_vm2, %v556_v29, %v553_v47  ;;  %v578_v59 = vadd.f32 1.0, %v1200_v54  ;;  %v1213_v62 = vpop.eup %934 }
 0x124   :  { %v687_v0 = vmul.f32 %v559_v44, %v1102_v55  ;;  %v631_v1 = vsel %vm1186_vm3, %v628_v45, %v625_v43  ;;  %v575_v55 = vand.u32 2147483647, %v1166_v63  ;;  %v650_v15 = vadd.f32 1.0, %v1213_v62 }
 0x125   :  { %v937_v4 = vpop.eup %936  ;;  %v695_v7 = vmul.f32 %v631_v1, %v1105_v56  ;;  %956 = vlog2.f32 %v578_v59  ;;  %v653_v39 = vmul.f32 -0.5, %v1213_v62  ;;  %v584_v45 = vand.u32 2147483647, %v1200_v54 }
 0x126   :  { %v939_v10 = vpop.eup %938  ;;  %703 = vst [vmem:[%s1338_s3 + $0x8] sm:$0xff] %v687_v0  ;;  %v562_v11 = vmul.f32 0.6931472, %v937_v4  ;;  %958 = vlog2.f32 %v650_v15  ;;  %vm576_vm6 = vcmp.lt.f32.partialorder %v575_v55, 0.0004427343 }
 0x127   :  { %711 = vst [vmem:[%s1338_s3 + $0x48] sm:$0xff] %v695_v7  ;;  %v634_v56 = vmul.f32 0.6931472, %v939_v10  ;;  %v654_v33 = vadd.f32 1.0, %v653_v39  ;;  %v656_v47 = vand.u32 2147483647, %v1213_v62 }
 0x128   :  { %v941_v19 = vpop.eup %940  ;;  %v568_v20 = vsel %vm567_vm4, %v565_v8, %v562_v11  ;;  %vm585_vm8 = vcmp.lt.f32.partialorder %v584_v45, 0.0004427343 }
 0x129   :  { %v943_v21 = vpop.eup %942  ;;  %v688_v22 = vmul.f32 %v568_v20, %v1110_v5  ;;  %v640_v23 = vsel %vm639_vm5, %v637_v50, %v634_v56  ;;  %v571_v24 = vmul.f32 0.6931472, %v941_v19  ;;  %v581_v5 = vmul.f32 -0.5, %v1200_v54 }
 0x12a   :  { %v1233_v30 = vpop.eup %944  ;;  %v696_v31 = vmul.f32 %v640_v23, %v1113_v6  ;;  %v643_v38 = vmul.f32 0.6931472, %v943_v21  ;;  %v655_v4 = vmul.f32 %v1213_v62, %v654_v33  ;;  %vm657_vm9 = vcmp.lt.f32.partialorder %v656_v47, 0.0004427343 }
 0x12b   :  { %v1237_v32 = vpop.eup %946  ;;  %704 = vst [vmem:[%s1338_s3 + $0x10] sm:$0xff] %v688_v22  ;;  %v577_v25 = vsel %vm576_vm6, %v574_v26, %v571_v24  ;;  %v587_v63 = vadd.f32 1.0, %v1233_v30  ;;  %v590_v57 = vmul.f32 -0.5, %v1233_v30 }
 0x12c   :  { %v1244_v29 = vpop.eup %948  ;;  %712 = vst [vmem:[%s1338_s3 + $0x50] sm:$0xff] %v696_v31  ;;  %v689_v6 = vmul.f32 %v577_v25, %v1118_v13  ;;  %v649_v3 = vsel %vm648_vm7, %v646_v51, %v643_v38  ;;  %v659_v35 = vadd.f32 1.0, %v1237_v32  ;;  %v582_v13 = vadd.f32 1.0, %v581_v5 }
 0x12d   :  { %v1251_v36 = vpop.eup %950  ;;  %v697_v37 = vmul.f32 %v649_v3, %v1121_v14  ;;  %960 = vlog2.f32 %v587_v63  ;;  %v596_v40 = vadd.f32 1.0, %v1244_v29  ;;  %v662_v44 = vmul.f32 -0.5, %v1237_v32 }
 0x12e   :  { %705 = vst [vmem:[%s1338_s3 + $0x18] sm:$0xff] %v689_v6  ;;  %962 = vlog2.f32 %v659_v35  ;;  %v1259_v41 = vpop.eup %952  ;;  %v668_v42 = vadd.f32 1.0, %v1251_v36  ;;  %v583_v43 = vmul.f32 %v1200_v54, %v582_v13  ;;  %v599_v0 = vmul.f32 -0.5, %v1244_v29 }
 0x12f   :  { %713 = vst [vmem:[%s1338_s3 + $0x58] sm:$0xff] %v697_v37  ;;  %v1265_v14 = vpop.eup %954  ;;  %964 = vlog2.f32 %v596_v40  ;;  %v605_v52 = vadd.f32 1.0, %v1259_v41  ;;  %v593_v54 = vand.u32 2147483647, %v1233_v30  ;;  %v591_v7 = vadd.f32 1.0, %v590_v57 }
 0x130   :  { %966 = vlog2.f32 %v668_v42  ;;  %v677_v58 = vadd.f32 1.0, %v1265_v14  ;;  %v671_v8 = vmul.f32 -0.5, %v1251_v36  ;;  %v663_v10 = vadd.f32 1.0, %v662_v44 }
 0x131   :  { %968 = vlog2.f32 %v605_v52  ;;  %v665_v11 = vand.u32 2147483647, %v1237_v32  ;;  %v602_v12 = vand.u32 2147483647, %v1244_v29  ;;  %vm1285_vm10 = vcmp.lt.f32.partialorder %v593_v54, 0.0004427343 }
 0x132   :  { %v957_v46 = vpop.eup %956  ;;  %970 = vlog2.f32 %v677_v58  ;;  %v608_v56 = vmul.f32 -0.5, %v1259_v41  ;;  %v592_v19 = vmul.f32 %v1233_v30, %v591_v7  ;;  %v672_v20 = vadd.f32 1.0, %v671_v8 }
 0x133   :  { %v580_v53 = vmul.f32 0.6931472, %v957_v46  ;;  %v959_v34 = vpop.eup %958  ;;  %v664_v22 = vmul.f32 %v1237_v32, %v663_v10  ;;  %vm666_vm11 = vcmp.lt.f32.partialorder %v665_v11, 0.0004427343  ;;  %v674_v23 = vand.u32 2147483647, %v1251_v36 }
 0x134   :  { %v652_v2 = vmul.f32 0.6931472, %v959_v34  ;;  %vm1300_vm12 = vcmp.lt.f32.partialorder %v602_v12, 0.0004427343  ;;  %v611_v30 = vand.u32 2147483647, %v1259_v41  ;;  %v673_v35 = vmul.f32 %v1251_v36, %v672_v20 }
 0x135   :  { %v586_v59 = vsel %vm585_vm8, %v583_v43, %v580_v53  ;;  %v609_v63 = vadd.f32 1.0, %v608_v56  ;;  %vm675_vm13 = vcmp.lt.f32.partialorder %v674_v23, 0.0004427343  ;;  %v683_v39 = vand.u32 2147483647, %v1265_v14 }
 0x136   :  { %v690_v1 = vmul.f32 %v586_v59, %v1126_v27  ;;  %v658_v9 = vsel %vm657_vm9, %v655_v4, %v652_v2  ;;  %v600_v27 = vadd.f32 1.0, %v599_v0  ;;  %vm612_vm14 = vcmp.lt.f32.partialorder %v611_v30, 0.0004427343 }
 0x137   :  { %v698_v55 = vmul.f32 %v658_v9, %v1129_v28  ;;  %v680_v28 = vmul.f32 -0.5, %v1265_v14  ;;  %v610_v45 = vmul.f32 %v1259_v41, %v609_v63  ;;  %vm684_vm15 = vcmp.lt.f32.partialorder %v683_v39, 0.0004427343 }
 0x138   :  { %706 = vst [vmem:[%s1338_s3 + $0x20] sm:$0xff] %v690_v1  ;;  %v601_v31 = vmul.f32 %v1244_v29, %v600_v27 }
 0x139   :  { %714 = vst [vmem:[%s1338_s3 + $0x60] sm:$0xff] %v698_v55  ;;  %v681_v37 = vadd.f32 1.0, %v680_v28 }
 0x13a   :  { %v961_v62 = vpop.eup %960 }
 0x13b   :  { %v963_v50 = vpop.eup %962  ;;  %v589_v17 = vmul.f32 0.6931472, %v961_v62  ;;  %v682_v33 = vmul.f32 %v1265_v14, %v681_v37 }
 0x13c   :  { %v661_v21 = vmul.f32 0.6931472, %v963_v50  ;;  %v965_v24 = vpop.eup %964 }
 0x13d   :  { %v595_v26 = vsel %vm1285_vm10, %v592_v19, %v589_v17  ;;  %v967_v51 = vpop.eup %966  ;;  %v598_v32 = vmul.f32 0.6931472, %v965_v24 }
 0x13e   :  { %v691_v25 = vmul.f32 %v595_v26, %v1134_v48  ;;  %v667_v5 = vsel %vm666_vm11, %v664_v22, %v661_v21  ;;  %v670_v3 = vmul.f32 0.6931472, %v967_v51  ;;  %v969_v48 = vpop.eup %968 }
 0x13f   :  { %v699_v6 = vmul.f32 %v667_v5, %v1137_v49  ;;  %v604_v29 = vsel %vm1300_vm12, %v601_v31, %v598_v32  ;;  %v971_v36 = vpop.eup %970  ;;  %v607_v42 = vmul.f32 0.6931472, %v969_v48 }
 0x140   :  { %707 = vst [vmem:[%s1338_s3 + $0x28] sm:$0xff] %v691_v25  ;;  %v692_v49 = vmul.f32 %v604_v29, %v1142_v60  ;;  %v676_v40 = vsel %vm675_vm13, %v673_v35, %v670_v3  ;;  %v679_v46 = vmul.f32 0.6931472, %v971_v36 }
 0x141   :  { %715 = vst [vmem:[%s1338_s3 + $0x68] sm:$0xff] %v699_v6  ;;  %v700_v13 = vmul.f32 %v676_v40, %v1145_v61  ;;  %v613_v60 = vsel %vm612_vm14, %v610_v45, %v607_v42 }
 0x142   :  { %708 = vst [vmem:[%s1338_s3 + $0x30] sm:$0xff] %v692_v49  ;;  %v693_v47 = vmul.f32 %v613_v60, %v1150_v16  ;;  %v685_v61 = vsel %vm684_vm15, %v682_v33, %v679_v46 }
 0x143   :  { %716 = vst [vmem:[%s1338_s3 + $0x70] sm:$0xff] %v700_v13  ;;  %v701_v52 = vmul.f32 %v685_v61, %v1153_v18 }
 0x144   :  { %709 = vst [vmem:[%s1338_s3 + $0x38] sm:$0xff] %v693_v47 }
 0x145   :  { %717 = vst [vmem:[%s1338_s3 + $0x78] sm:$0xff] %v701_v52 }

// kernel: bottleneck_logish_forward.5
= control target key start
LH: loop header
LB: loop body
LE: loop exit
PB: predicated region body
PF: predicated region fallthrough
CT: control target
= control target key end

     0   :  { %s1331_s0 = inlined_call_operand.vmem [shape: bf16[128,256], index: 0, kind: input, shape index: {}]   ;;  %s1332_s1 = inlined_call_operand.vmem [shape: bf16[256,128], index: 1, kind: input, shape index: {}]   ;;  %s1333_s2 = inlined_call_operand.vmem [shape: f32[1,128], index: 2, kind: input, shape index: {}]   ;;  %s1334_s3 = inlined_call_operand.hbm [shape: f32[128,128], index: 3, kind: output, shape index: {}]  }
   0x1   :  { %v852_v0 = vld [vmem:[%s1332_s1 + $0x78] sm:$0xff]   ;;  %v854_v2 = vld [vmem:[%s1332_s1 + $0x70] sm:$0xff]   ;;  %v856_v4 = vld [vmem:[%s1332_s1 + $0x68] sm:$0xff]  }
   0x2   :  { %v853_v1 = vld [vmem:[%s1332_s1 + $0x38] sm:$0xff]   ;;  %768 = vmatprep.subr.bf16.mxu0 %v852_v0  ;;  %832 = vmatprep.subr.bf16.mxu1 %v852_v0  ;;  %v855_v3 = vld [vmem:[%s1332_s1 + $0x30] sm:$0xff]   ;;  %v857_v5 = vld [vmem:[%s1332_s1 + $0x28] sm:$0xff]  }
   0x3   :  { %769 = vmatpush3.bf16.msra.mxu0 %v853_v1  ;;  %840 = vmatpush3.bf16.msra.mxu1 %v853_v1  ;;  %v858_v6 = vld [vmem:[%s1332_s1 + $0x60] sm:$0xff]   ;;  %v860_v8 = vld [vmem:[%s1332_s1 + $0x58] sm:$0xff]   ;;  %v862_v10 = vld [vmem:[%s1332_s1 + $0x50] sm:$0xff]  }
   0x4   :  { %770 = vmatprep.subr.bf16.mxu0 %v854_v2  ;;  %833 = vmatprep.subr.bf16.mxu1 %v854_v2  ;;  %v859_v7 = vld [vmem:[%s1332_s1 + $0x20] sm:$0xff]   ;;  %v861_v9 = vld [vmem:[%s1332_s1 + $0x18] sm:$0xff]   ;;  %v863_v13 = vld [vmem:[%s1332_s1 + $0x10] sm:$0xff]  }
   0x5   :  { %v870_v11 = vld [vmem:[%s1331_s0 + $0x4] ss:$8 sps:$4 sm:$0xff]  }
   0x6   :  { %v873_v12 = vld [vmem:[%s1331_s0 + $0x44] ss:$8 sps:$4 sm:$0xff]   ;;  %308 = vmatprep.mubr.bf16.mxu0 %v870_v11 }
   0x7   :  { %771 = vmatpush3.bf16.msra.mxu0 %v855_v3  ;;  %841 = vmatpush3.bf16.msra.mxu1 %v855_v3  ;;  %v864_v14 = vld [vmem:[%s1332_s1 + $0x48] sm:$0xff]   ;;  %v866_v16 = vld [vmem:[%s1332_s1 + $0x40] sm:$0xff]  }
   0x8   :  { %772 = vmatprep.subr.bf16.mxu0 %v856_v4  ;;  %834 = vmatprep.subr.bf16.mxu1 %v856_v4  ;;  %v865_v15 = vld [vmem:[%s1332_s1 + $0x8] sm:$0xff]  }
   0x9   :  { %340 = vmatprep.mubr.bf16.mxu1 %v873_v12 }
   0xb   :  { %773 = vmatpush3.bf16.msra.mxu0 %v857_v5  ;;  %842 = vmatpush3.bf16.msra.mxu1 %v857_v5 }
   0xc   :  { %774 = vmatprep.subr.bf16.mxu0 %v858_v6  ;;  %835 = vmatprep.subr.bf16.mxu1 %v858_v6 }
   0xf   :  { %775 = vmatpush3.bf16.msra.mxu0 %v859_v7  ;;  %843 = vmatpush3.bf16.msra.mxu1 %v859_v7 }
  0x10   :  { %776 = vmatprep.subr.bf16.mxu0 %v860_v8  ;;  %836 = vmatprep.subr.bf16.mxu1 %v860_v8 }
  0x13   :  { %777 = vmatpush3.bf16.msra.mxu0 %v861_v9  ;;  %844 = vmatpush3.bf16.msra.mxu1 %v861_v9 }
  0x14   :  { %778 = vmatprep.subr.bf16.mxu0 %v862_v10  ;;  %837 = vmatprep.subr.bf16.mxu1 %v862_v10 }
  0x17   :  { %779 = vmatpush3.bf16.msra.mxu0 %v863_v13  ;;  %845 = vmatpush3.bf16.msra.mxu1 %v863_v13 }
  0x18   :  { %780 = vmatprep.subr.bf16.mxu0 %v864_v14  ;;  %838 = vmatprep.subr.bf16.mxu1 %v864_v14 }
  0x19   :  { %8 = vsyncpa [#allocation3], 0  ;;  %v867_v17 = vld [vmem:[%s1332_s1] sm:$0xff]   ;;  %v874_v20 = vld [vmem:[%s1331_s0 + $0x14] ss:$8 sps:$4 sm:$0xff]  }
  0x1a   :  { %v868_v18 = vld [vmem:[%s1331_s0] ss:$8 sps:$4 sm:$0xff]   ;;  %v876_v21 = vld [vmem:[%s1331_s0 + $0x54] ss:$8 sps:$4 sm:$0xff]   ;;  %v878_v22 = vld [vmem:[%s1331_s0 + $0x10] ss:$8 sps:$4 sm:$0xff]  }
  0x1b   :  { %781 = vmatpush3.bf16.msra.mxu0 %v865_v15  ;;  %846 = vmatpush3.bf16.msra.mxu1 %v865_v15  ;;  %v871_v19 = vld [vmem:[%s1331_s0 + $0x40] ss:$8 sps:$4 sm:$0xff]   ;;  %v879_v23 = vld [vmem:[%s1331_s0 + $0x50] ss:$8 sps:$4 sm:$0xff]   ;;  %v880_v24 = vld [vmem:[%s1331_s0 + $0x24] ss:$8 sps:$4 sm:$0xff]  }
  0x1c   :  { %782 = vmatprep.subr.bf16.mxu0 %v866_v16  ;;  %839 = vmatprep.subr.bf16.mxu1 %v866_v16  ;;  %v882_v25 = vld [vmem:[%s1331_s0 + $0x64] ss:$8 sps:$4 sm:$0xff]   ;;  %v884_v26 = vld [vmem:[%s1331_s0 + $0x20] ss:$8 sps:$4 sm:$0xff]   ;;  %v886_v28 = vld [vmem:[%s1331_s0 + $0x34] ss:$8 sps:$4 sm:$0xff]  }
  0x1d   :  { %v885_v27 = vld [vmem:[%s1331_s0 + $0x60] ss:$8 sps:$4 sm:$0xff]   ;;  %v888_v29 = vld [vmem:[%s1331_s0 + $0x74] ss:$8 sps:$4 sm:$0xff]   ;;  %v890_v30 = vld [vmem:[%s1331_s0 + $0x30] ss:$8 sps:$4 sm:$0xff]  }
  0x1e   :  { %v891_v31 = vld [vmem:[%s1331_s0 + $0x70] ss:$8 sps:$4 sm:$0xff]   ;;  %v1132_v38 = vld [vmem:[%s1333_s2] ss:$0 sm:$0xff]  ;;  %s1010_s0 = smov [#allocation2]  }
  0x1f   :  { %783 = vmatpush3.bf16.msra.mxu0 %v867_v17  ;;  %847 = vmatpush3.bf16.msra.mxu1 %v867_v17  ;;  %s724_s2 = sshll.u32 %s1010_s0, 4  ;;  %s725_s2 = int_to_ptr.vmem [resolvable:$true] %s724_s2 }
  0x20   :  { %s988_s23 = scalar_lea.vmem %s725_s2, 2048  ;;  %p993_p1 = scmp.lt.s32.totalorder %s725_s2, %s725_s2 }
  0x21   :  { %p989_p0 = scmp.ne.s32.totalorder %s725_s2, %s988_s23  ;;  %p994_p2 = scmp.lt.s32.totalorder %s988_s23, %s988_s23 }
  0x22   :  { %309 = vmatmul.mubr.bf16.vlgmr.msra.gmra.mxu0 %v868_v18  ;;  %341 = vmatmul.mubr.bf16.vlgmr.msra.gmra.mxu1 %v871_v19 }
  0x23   :  { %316 = vmatprep.mubr.bf16.mxu0 %v874_v20  ;;  %348 = vmatprep.mubr.bf16.mxu1 %v876_v21  ;;  %p995_p3 = por %p994_p2, %p993_p1 }
  0x25   :  { %p996_p4 = pnand %p995_p3, %p989_p0 }
  0x2a   :  { %317 = vmatmul.mubr.bf16.gmra.mxu0 %v878_v22  ;;  %349 = vmatmul.mubr.bf16.gmra.mxu1 %v879_v23 }
  0x2b   :  { %324 = vmatprep.mubr.bf16.mxu0 %v880_v24  ;;  %356 = vmatprep.mubr.bf16.mxu1 %v882_v25 }
  0x32   :  { %325 = vmatmul.mubr.bf16.gmra.mxu0 %v884_v26  ;;  %357 = vmatmul.mubr.bf16.gmra.mxu1 %v885_v27 }
  0x33   :  { %332 = vmatprep.mubr.bf16.mxu0 %v886_v28  ;;  %364 = vmatprep.mubr.bf16.mxu1 %v888_v29 }
  0x3a   :  { %333 = vmatmul.mubr.bf16.gmra.mxu0 %v890_v30  ;;  %365 = vmatmul.mubr.bf16.gmra.mxu1 %v891_v31 }
  0xe2   :  { %v784_v32 = vpop.f32.mrf.mxu0  ;;  %v808_v33 = vpop.f32.mrf.mxu1 }
  0xe4   :  { %v785_v34 = vpop.f32.mrf.mxu0  ;;  %v809_v35 = vpop.f32.mrf.mxu1 }
  0xe5   :  { %v786_v36 = vadd.f32 %v785_v34, %v784_v32  ;;  %v810_v37 = vadd.f32 %v809_v35, %v808_v33 }
  0xe6   :  { %v787_v39 = vpop.f32.mrf.mxu0  ;;  %v811_v40 = vpop.f32.mrf.mxu1 }
  0xe7   :  { %v1135_v43 = vadd.f32 %v786_v36, %v1132_v38  ;;  %v1138_v44 = vadd.f32 %v810_v37, %v1132_v38 }
  0xe8   :  { %v788_v41 = vpop.f32.mrf.mxu0  ;;  %v812_v42 = vpop.f32.mrf.mxu1 }
  0xe9   :  { %v789_v45 = vadd.f32 %v788_v41, %v787_v39  ;;  %v813_v46 = vadd.f32 %v812_v42, %v811_v40  ;;  %v447_v49 = vsub.f32 0.0, %v1135_v43  ;;  %v455_v50 = vsub.f32 0.0, %v1138_v44 }
  0xea   :  { %v790_v47 = vpop.f32.mrf.mxu0  ;;  %v814_v48 = vpop.f32.mrf.mxu1 }
  0xeb   :  { %v463_v53 = vmul.f32 1.442695, %v447_v49  ;;  %v479_v54 = vmul.f32 1.442695, %v455_v50  ;;  %v1143_v55 = vadd.f32 %v789_v45, %v1132_v38  ;;  %v1146_v56 = vadd.f32 %v813_v46, %v1132_v38 }
  0xec   :  { %v791_v51 = vpop.f32.mrf.mxu0  ;;  %v815_v52 = vpop.f32.mrf.mxu1 }
  0xed   :  { %v792_v57 = vadd.f32 %v791_v51, %v790_v47  ;;  %v816_v58 = vadd.f32 %v815_v52, %v814_v48  ;;  %892 = vpow2.f32 %v463_v53  ;;  %v448_v61 = vsub.f32 0.0, %v1143_v55 }
  0xee   :  { %v793_v59 = vpop.f32.mrf.mxu0  ;;  %v817_v60 = vpop.f32.mrf.mxu1  ;;  %v456_v62 = vsub.f32 0.0, %v1146_v56  ;;  %894 = vpow2.f32 %v479_v54 }
  0xef   :  { %v465_v1 = vmul.f32 1.442695, %v448_v61  ;;  %v1151_v5 = vadd.f32 %v792_v57, %v1132_v38  ;;  %v1154_v6 = vadd.f32 %v816_v58, %v1132_v38 }
  0xf0   :  { %v794_v63 = vpop.f32.mrf.mxu0  ;;  %v818_v0 = vpop.f32.mrf.mxu1  ;;  %v481_v2 = vmul.f32 1.442695, %v456_v62 }
  0xf1   :  { %v795_v3 = vadd.f32 %v794_v63, %v793_v59  ;;  %v819_v4 = vadd.f32 %v818_v0, %v817_v60  ;;  %896 = vpow2.f32 %v465_v1  ;;  %v449_v9 = vsub.f32 0.0, %v1151_v5 }
  0xf2   :  { %v796_v7 = vpop.f32.mrf.mxu0  ;;  %v820_v8 = vpop.f32.mrf.mxu1  ;;  %898 = vpow2.f32 %v481_v2  ;;  %v457_v10 = vsub.f32 0.0, %v1154_v6 }
  0xf3   :  { %v1159_v13 = vadd.f32 %v795_v3, %v1132_v38  ;;  %v1162_v14 = vadd.f32 %v819_v4, %v1132_v38  ;;  %v467_v17 = vmul.f32 1.442695, %v449_v9 }
  0xf4   :  { %v797_v11 = vpop.f32.mrf.mxu0  ;;  %v821_v12 = vpop.f32.mrf.mxu1  ;;  %v483_v18 = vmul.f32 1.442695, %v457_v10 }
  0xf5   :  { %v798_v15 = vadd.f32 %v797_v11, %v796_v7  ;;  %v822_v16 = vadd.f32 %v821_v12, %v820_v8  ;;  %v450_v21 = vsub.f32 0.0, %v1159_v13  ;;  %v458_v22 = vsub.f32 0.0, %v1162_v14 }
  0xf6   :  { %v799_v19 = vpop.f32.mrf.mxu0  ;;  %v823_v20 = vpop.f32.mrf.mxu1  ;;  %900 = vpow2.f32 %v467_v17 }
  0xf7   :  { %902 = vpow2.f32 %v483_v18  ;;  %v469_v25 = vmul.f32 1.442695, %v450_v21  ;;  %v485_v26 = vmul.f32 1.442695, %v458_v22  ;;  %v1167_v27 = vadd.f32 %v798_v15, %v1132_v38 }
  0xf8   :  { %v800_v23 = vpop.f32.mrf.mxu0  ;;  %v824_v24 = vpop.f32.mrf.mxu1  ;;  %v1170_v28 = vadd.f32 %v822_v16, %v1132_v38 }
  0xf9   :  { %v801_v29 = vadd.f32 %v800_v23, %v799_v19  ;;  %v825_v30 = vadd.f32 %v824_v24, %v823_v20  ;;  %904 = vpow2.f32 %v469_v25  ;;  %v451_v33 = vsub.f32 0.0, %v1167_v27 }
  0xfa   :  { %v802_v31 = vpop.f32.mrf.mxu0  ;;  %v826_v32 = vpop.f32.mrf.mxu1  ;;  %906 = vpow2.f32 %v485_v26  ;;  %v459_v35 = vsub.f32 0.0, %v1170_v28 }
  0xfb   :  { %v893_v34 = vpop.eup %892  ;;  %v471_v41 = vmul.f32 1.442695, %v451_v33  ;;  %v1175_v48 = vadd.f32 %v801_v29, %v1132_v38  ;;  %v1178_v49 = vadd.f32 %v825_v30, %v1132_v38 }
  0xfc   :  { %v803_v36 = vpop.f32.mrf.mxu0  ;;  %v827_v37 = vpop.f32.mrf.mxu1  ;;  %v495_v40 = vadd.f32 1.0, %v893_v34  ;;  %v487_v47 = vmul.f32 1.442695, %v459_v35 }
  0xfd   :  { %v895_v39 = vpop.eup %894  ;;  %v804_v42 = vadd.f32 %v803_v36, %v802_v31  ;;  %v828_v45 = vadd.f32 %v827_v37, %v826_v32  ;;  %v452_v53 = vsub.f32 0.0, %v1175_v48  ;;  %v460_v54 = vsub.f32 0.0, %v1178_v49 }
  0xfe   :  { %v503_v46 = vadd.f32 1.0, %v895_v39  ;;  %v805_v50 = vpop.f32.mrf.mxu0  ;;  %v829_v51 = vpop.f32.mrf.mxu1  ;;  %908 = vrcp.f32 %v495_v40 }
  0xff   :  { %v897_v52 = vpop.eup %896  ;;  %v1183_v60 = vadd.f32 %v804_v42, %v1132_v38  ;;  %v1186_v61 = vadd.f32 %v828_v45, %v1132_v38  ;;  %v473_v0 = vmul.f32 1.442695, %v452_v53  ;;  %v489_v1 = vmul.f32 1.442695, %v460_v54 }
 0x100   :  { %910 = vrcp.f32 %v503_v46  ;;  %v806_v57 = vpop.f32.mrf.mxu0  ;;  %v899_v58 = vpop.eup %898  ;;  %v496_v59 = vadd.f32 1.0, %v897_v52 }
 0x101   :  { %912 = vpow2.f32 %v471_v41  ;;  %v830_v62 = vpop.f32.mrf.mxu1  ;;  %v504_v63 = vadd.f32 1.0, %v899_v58  ;;  %v453_v2 = vsub.f32 0.0, %v1183_v60  ;;  %v461_v3 = vsub.f32 0.0, %v1186_v61 }
 0x102   :  { %914 = vpow2.f32 %v487_v47  ;;  %v807_v4 = vadd.f32 %v806_v57, %v805_v50  ;;  %v831_v7 = vadd.f32 %v830_v62, %v829_v51 }
 0x103   :  { %916 = vrcp.f32 %v496_v59  ;;  %v901_v8 = vpop.eup %900  ;;  %v475_v9 = vmul.f32 1.442695, %v453_v2  ;;  %v491_v12 = vmul.f32 1.442695, %v461_v3 }
 0x104   :  { %918 = vrcp.f32 %v504_v63  ;;  %v903_v10 = vpop.eup %902  ;;  %v497_v11 = vadd.f32 1.0, %v901_v8  ;;  %v1191_v16 = vadd.f32 %v807_v4, %v1132_v38  ;;  %v1194_v18 = vadd.f32 %v831_v7, %v1132_v38 }
 0x105   :  { %920 = vpow2.f32 %v473_v0  ;;  %v505_v15 = vadd.f32 1.0, %v903_v10 }
 0x106   :  { %922 = vpow2.f32 %v489_v1  ;;  %v905_v17 = vpop.eup %904  ;;  %v454_v21 = vsub.f32 0.0, %v1191_v16  ;;  %v462_v23 = vsub.f32 0.0, %v1194_v18 }
 0x107   :  { %924 = vpow2.f32 %v475_v9  ;;  %v907_v19 = vpop.eup %906  ;;  %v498_v20 = vadd.f32 1.0, %v905_v17 }
 0x108   :  { %926 = vrcp.f32 %v497_v11  ;;  %v506_v22 = vadd.f32 1.0, %v907_v19  ;;  %v477_v24 = vmul.f32 1.442695, %v454_v21  ;;  %v493_v26 = vmul.f32 1.442695, %v462_v23 }
 0x109   :  { %928 = vrcp.f32 %v505_v15 }
 0x10a   :  { %930 = vpow2.f32 %v491_v12 }
 0x10b   :  { %932 = vrcp.f32 %v498_v20  ;;  %v909_v25 = vpop.eup %908 }
 0x10c   :  { %934 = vrcp.f32 %v506_v22  ;;  %v543_v30 = vadd.f32 1.0, %v909_v25  ;;  %v546_v41 = vmul.f32 -0.5, %v909_v25  ;;  %v549_v47 = vand.u32 2147483647, %v909_v25 }
 0x10d   :  { %v911_v29 = vpop.eup %910  ;;  %936 = vpow2.f32 %v477_v24 }
 0x10e   :  { %v913_v31 = vpop.eup %912  ;;  %v615_v38 = vadd.f32 1.0, %v911_v29  ;;  %938 = vpow2.f32 %v493_v26  ;;  %v618_v42 = vmul.f32 -0.5, %v911_v29  ;;  %v621_v52 = vand.u32 2147483647, %v911_v29 }
 0x10f   :  { %v915_v32 = vpop.eup %914  ;;  %940 = vlog2.f32 %v543_v30  ;;  %v499_v36 = vadd.f32 1.0, %v913_v31  ;;  %v547_v58 = vadd.f32 1.0, %v546_v41  ;;  %vm1209_vm0 = vcmp.lt.f32.partialorder %v549_v47, 0.0004427343 }
 0x110   :  { %v917_v33 = vpop.eup %916  ;;  %942 = vlog2.f32 %v615_v38  ;;  %v507_v45 = vadd.f32 1.0, %v915_v32  ;;  %v619_v59 = vadd.f32 1.0, %v618_v42  ;;  %vm1218_vm1 = vcmp.lt.f32.partialorder %v621_v52, 0.0004427343 }
 0x111   :  { %v1198_v34 = vpop.eup %918  ;;  %v552_v35 = vadd.f32 1.0, %v917_v33  ;;  %v555_v53 = vmul.f32 -0.5, %v917_v33  ;;  %v558_v1 = vand.u32 2147483647, %v917_v33  ;;  %v548_v19 = vmul.f32 %v909_v25, %v547_v58 }
 0x112   :  { %v921_v37 = vpop.eup %920  ;;  %v624_v39 = vadd.f32 1.0, %v1198_v34  ;;  %v627_v2 = vmul.f32 -0.5, %v1198_v34  ;;  %v630_v4 = vand.u32 2147483647, %v1198_v34  ;;  %v620_v20 = vmul.f32 %v911_v29, %v619_v59 }
 0x113   :  { %v923_v40 = vpop.eup %922  ;;  %944 = vlog2.f32 %v552_v35  ;;  %v500_v8 = vadd.f32 1.0, %v921_v37  ;;  %v556_v11 = vadd.f32 1.0, %v555_v53  ;;  %vm1223_vm2 = vcmp.lt.f32.partialorder %v558_v1, 0.0004427343 }
 0x114   :  { %v925_v46 = vpop.eup %924  ;;  %946 = vlog2.f32 %v624_v39  ;;  %v508_v15 = vadd.f32 1.0, %v923_v40  ;;  %v628_v24 = vadd.f32 1.0, %v627_v2  ;;  %vm1227_vm3 = vcmp.lt.f32.partialorder %v630_v4, 0.0004427343 }
 0x115   :  { %v1201_v50 = vpop.eup %926  ;;  %948 = vrcp.f32 %v499_v36  ;;  %v501_v21 = vadd.f32 1.0, %v925_v46  ;;  %v557_v29 = vmul.f32 %v917_v33, %v556_v11 }
 0x116   :  { %v1203_v51 = vpop.eup %928  ;;  %v561_v54 = vadd.f32 1.0, %v1201_v50  ;;  %950 = vrcp.f32 %v507_v45  ;;  %v564_v32 = vmul.f32 -0.5, %v1201_v50  ;;  %v629_v45 = vmul.f32 %v1198_v34, %v628_v24 }
 0x117   :  { %v931_v57 = vpop.eup %930  ;;  %v633_v62 = vadd.f32 1.0, %v1203_v51  ;;  %v636_v37 = vmul.f32 -0.5, %v1203_v51  ;;  %v567_v58 = vand.u32 2147483647, %v1201_v50  ;;  %v639_v2 = vand.u32 2147483647, %v1203_v51 }
 0x118   :  { %v1207_v63 = vpop.eup %932  ;;  %952 = vlog2.f32 %v561_v54  ;;  %v509_v26 = vadd.f32 1.0, %v931_v57  ;;  %v565_v52 = vadd.f32 1.0, %v564_v32 }
 0x119   :  { %v1214_v3 = vpop.eup %934  ;;  %954 = vlog2.f32 %v633_v62  ;;  %v570_v7 = vadd.f32 1.0, %v1207_v63  ;;  %v573_v53 = vmul.f32 -0.5, %v1207_v63  ;;  %v637_v59 = vadd.f32 1.0, %v636_v37 }
 0x11a   :  { %v937_v9 = vpop.eup %936  ;;  %v642_v12 = vadd.f32 1.0, %v1214_v3  ;;  %vm568_vm4 = vcmp.lt.f32.partialorder %v567_v58, 0.0004427343  ;;  %vm640_vm5 = vcmp.lt.f32.partialorder %v639_v2, 0.0004427343 }
 0x11b   :  { %v939_v17 = vpop.eup %938  ;;  %956 = vlog2.f32 %v570_v7  ;;  %v502_v35 = vadd.f32 1.0, %v937_v9  ;;  %v574_v9 = vadd.f32 1.0, %v573_v53 }
 0x11c   :  { %v941_v22 = vpop.eup %940  ;;  %958 = vlog2.f32 %v642_v12  ;;  %v510_v39 = vadd.f32 1.0, %v939_v17  ;;  %v576_v12 = vand.u32 2147483647, %v1207_v63 }
 0x11d   :  { %v943_v30 = vpop.eup %942  ;;  %v545_v31 = vmul.f32 0.6931472, %v941_v22  ;;  %960 = vrcp.f32 %v500_v8  ;;  %v566_v8 = vmul.f32 %v1201_v50, %v565_v52 }
 0x11e   :  { %v617_v25 = vmul.f32 0.6931472, %v943_v30  ;;  %962 = vrcp.f32 %v508_v15  ;;  %vm577_vm6 = vcmp.lt.f32.partialorder %v576_v12, 0.0004427343 }
 0x11f   :  { %v551_v36 = vsel %vm1209_vm0, %v548_v19, %v545_v31  ;;  %964 = vrcp.f32 %v501_v21  ;;  %v638_v19 = vmul.f32 %v1203_v51, %v637_v59 }
 0x120   :  { %v945_v40 = vpop.eup %944  ;;  %v687_v41 = vmul.f32 %v551_v36, %v1135_v43  ;;  %v623_v42 = vsel %vm1218_vm1, %v620_v20, %v617_v25  ;;  %966 = vrcp.f32 %v509_v26  ;;  %v645_v43 = vmul.f32 -0.5, %v1214_v3 }
 0x121   :  { %v947_v46 = vpop.eup %946  ;;  %v695_v33 = vmul.f32 %v623_v42, %v1138_v44  ;;  %v554_v47 = vmul.f32 0.6931472, %v945_v40  ;;  %968 = vrcp.f32 %v502_v35  ;;  %v648_v20 = vand.u32 2147483647, %v1214_v3 }
 0x122   :  { %v1241_v54 = vpop.eup %948  ;;  %703 = vst [vmem:[#allocation2] sm:$0xff] %v687_v41  ;;  %v626_v57 = vmul.f32 0.6931472, %v947_v46  ;;  %970 = vrcp.f32 %v510_v39  ;;  %v646_v15 = vadd.f32 1.0, %v645_v43  ;;  %v575_v26 = vmul.f32 %v1207_v63, %v574_v9 }
 0x123   :  { %711 = vst [vmem:[#allocation2 + $0x40] sm:$0xff] %v695_v33  ;;  %v560_v34 = vsel %vm1223_vm2, %v557_v29, %v554_v47  ;;  %v579_v44 = vadd.f32 1.0, %v1241_v54  ;;  %v1248_v62 = vpop.eup %950  ;;  %vm649_vm7 = vcmp.lt.f32.partialorder %v648_v20, 0.0004427343  ;;  %v582_v29 = vmul.f32 -0.5, %v1241_v54 }
 0x124   :  { %v688_v0 = vmul.f32 %v560_v34, %v1143_v55  ;;  %v632_v1 = vsel %vm1227_vm3, %v629_v45, %v626_v57  ;;  %v651_v55 = vadd.f32 1.0, %v1248_v62  ;;  %v647_v51 = vmul.f32 %v1214_v3, %v646_v15 }
 0x125   :  { %v953_v4 = vpop.eup %952  ;;  %v696_v7 = vmul.f32 %v632_v1, %v1146_v56  ;;  %972 = vlog2.f32 %v579_v44  ;;  %v654_v39 = vmul.f32 -0.5, %v1248_v62  ;;  %v583_v42 = vadd.f32 1.0, %v582_v29 }
 0x126   :  { %v955_v10 = vpop.eup %954  ;;  %704 = vst [vmem:[#allocation2 + $0x8] sm:$0xff] %v688_v0  ;;  %v563_v11 = vmul.f32 0.6931472, %v953_v4  ;;  %974 = vlog2.f32 %v651_v55  ;;  %v585_v46 = vand.u32 2147483647, %v1241_v54 }
 0x127   :  { %712 = vst [vmem:[#allocation2 + $0x48] sm:$0xff] %v696_v7  ;;  %v635_v17 = vmul.f32 0.6931472, %v955_v10  ;;  %v655_v33 = vadd.f32 1.0, %v654_v39  ;;  %v657_v47 = vand.u32 2147483647, %v1248_v62  ;;  %v584_v57 = vmul.f32 %v1241_v54, %v583_v42 }
 0x128   :  { %v957_v56 = vpop.eup %956  ;;  %v569_v21 = vsel %vm568_vm4, %v566_v8, %v563_v11  ;;  %vm586_vm8 = vcmp.lt.f32.partialorder %v585_v46, 0.0004427343 }
 0x129   :  { %v959_v50 = vpop.eup %958  ;;  %v689_v22 = vmul.f32 %v569_v21, %v1151_v5  ;;  %v641_v23 = vsel %vm640_vm5, %v638_v19, %v635_v17  ;;  %v572_v24 = vmul.f32 0.6931472, %v957_v56  ;;  %v656_v4 = vmul.f32 %v1248_v62, %v655_v33 }
 0x12a   :  { %v1262_v30 = vpop.eup %960  ;;  %v697_v31 = vmul.f32 %v641_v23, %v1154_v6  ;;  %v644_v38 = vmul.f32 0.6931472, %v959_v50  ;;  %vm658_vm9 = vcmp.lt.f32.partialorder %v657_v47, 0.0004427343 }
 0x12b   :  { %v1266_v32 = vpop.eup %962  ;;  %705 = vst [vmem:[#allocation2 + $0x10] sm:$0xff] %v689_v22  ;;  %v578_v25 = vsel %vm577_vm6, %v575_v26, %v572_v24  ;;  %v588_v5 = vadd.f32 1.0, %v1262_v30  ;;  %v591_v58 = vmul.f32 -0.5, %v1262_v30  ;;  %v594_v54 = vand.u32 2147483647, %v1262_v30 }
 0x12c   :  { %v1270_v35 = vpop.eup %964  ;;  %713 = vst [vmem:[#allocation2 + $0x50] sm:$0xff] %v697_v31  ;;  %v690_v63 = vmul.f32 %v578_v25, %v1159_v13  ;;  %v650_v36 = vsel %vm649_vm7, %v647_v51, %v644_v38  ;;  %v660_v6 = vadd.f32 1.0, %v1266_v32  ;;  %v663_v34 = vmul.f32 -0.5, %v1266_v32 }
 0x12d   :  { %v1274_v37 = vpop.eup %966  ;;  %v698_v3 = vmul.f32 %v650_v36, %v1162_v14  ;;  %976 = vlog2.f32 %v588_v5  ;;  %v597_v40 = vadd.f32 1.0, %v1270_v35  ;;  %v600_v0 = vmul.f32 -0.5, %v1270_v35 }
 0x12e   :  { %706 = vst [vmem:[#allocation2 + $0x18] sm:$0xff] %v690_v63  ;;  %978 = vlog2.f32 %v660_v6  ;;  %v1279_v41 = vpop.eup %968  ;;  %v669_v13 = vadd.f32 1.0, %v1274_v37  ;;  %v592_v7 = vadd.f32 1.0, %v591_v58  ;;  %v672_v8 = vmul.f32 -0.5, %v1274_v37 }
 0x12f   :  { %714 = vst [vmem:[#allocation2 + $0x58] sm:$0xff] %v698_v3  ;;  %v1282_v45 = vpop.eup %970  ;;  %980 = vlog2.f32 %v597_v40  ;;  %v606_v52 = vadd.f32 1.0, %v1279_v41  ;;  %v664_v10 = vadd.f32 1.0, %v663_v34  ;;  %v666_v11 = vand.u32 2147483647, %v1266_v32 }
 0x130   :  { %982 = vlog2.f32 %v669_v13  ;;  %v678_v43 = vadd.f32 1.0, %v1282_v45  ;;  %v601_v15 = vadd.f32 1.0, %v600_v0  ;;  %v603_v55 = vand.u32 2147483647, %v1270_v35 }
 0x131   :  { %984 = vlog2.f32 %v606_v52  ;;  %vm1299_vm10 = vcmp.lt.f32.partialorder %v594_v54, 0.0004427343  ;;  %v609_v62 = vmul.f32 -0.5, %v1279_v41  ;;  %v593_v56 = vmul.f32 %v1262_v30, %v592_v7 }
 0x132   :  { %v973_v14 = vpop.eup %972  ;;  %986 = vlog2.f32 %v678_v43  ;;  %v673_v21 = vadd.f32 1.0, %v672_v8  ;;  %v681_v50 = vmul.f32 -0.5, %v1282_v45  ;;  %vm667_vm11 = vcmp.lt.f32.partialorder %v666_v11, 0.0004427343 }
 0x133   :  { %v581_v53 = vmul.f32 0.6931472, %v973_v14  ;;  %v975_v59 = vpop.eup %974  ;;  %v675_v23 = vand.u32 2147483647, %v1274_v37  ;;  %v602_v31 = vmul.f32 %v1270_v35, %v601_v15  ;;  %vm1311_vm12 = vcmp.lt.f32.partialorder %v603_v55, 0.0004427343 }
 0x134   :  { %v653_v2 = vmul.f32 0.6931472, %v975_v59  ;;  %v612_v30 = vand.u32 2147483647, %v1279_v41  ;;  %v610_v5 = vadd.f32 1.0, %v609_v62  ;;  %v674_v6 = vmul.f32 %v1274_v37, %v673_v21 }
 0x135   :  { %v587_v44 = vsel %vm586_vm8, %v584_v57, %v581_v53  ;;  %v682_v3 = vadd.f32 1.0, %v681_v50  ;;  %vm676_vm13 = vcmp.lt.f32.partialorder %v675_v23, 0.0004427343  ;;  %v684_v39 = vand.u32 2147483647, %v1282_v45 }
 0x136   :  { %v691_v1 = vmul.f32 %v587_v44, %v1167_v27  ;;  %v659_v9 = vsel %vm658_vm9, %v656_v4, %v653_v2  ;;  %v611_v14 = vmul.f32 %v1279_v41, %v610_v5  ;;  %vm613_vm14 = vcmp.lt.f32.partialorder %v612_v30, 0.0004427343 }
 0x137   :  { %v699_v12 = vmul.f32 %v659_v9, %v1170_v28  ;;  %v665_v28 = vmul.f32 %v1266_v32, %v664_v10  ;;  %v683_v33 = vmul.f32 %v1282_v45, %v682_v3  ;;  %vm685_vm15 = vcmp.lt.f32.partialorder %v684_v39, 0.0004427343 }
 0x138   :  { %707 = vst [vmem:[#allocation2 + $0x20] sm:$0xff] %v691_v1 }
 0x139   :  { %715 = vst [vmem:[#allocation2 + $0x60] sm:$0xff] %v699_v12 }
 0x13a   :  { %v977_v27 = vpop.eup %976 }
 0x13b   :  { %v979_v19 = vpop.eup %978  ;;  %v590_v20 = vmul.f32 0.6931472, %v977_v27 }
 0x13c   :  { %v662_v22 = vmul.f32 0.6931472, %v979_v19  ;;  %v981_v24 = vpop.eup %980 }
 0x13d   :  { %v596_v26 = vsel %vm1299_vm10, %v593_v56, %v590_v20  ;;  %v983_v51 = vpop.eup %982  ;;  %v599_v32 = vmul.f32 0.6931472, %v981_v24 }
 0x13e   :  { %v692_v25 = vmul.f32 %v596_v26, %v1175_v48  ;;  %v668_v29 = vsel %vm667_vm11, %v665_v28, %v662_v22  ;;  %v671_v36 = vmul.f32 0.6931472, %v983_v51  ;;  %v985_v40 = vpop.eup %984 }
 0x13f   :  { %v700_v63 = vmul.f32 %v668_v29, %v1178_v49  ;;  %v605_v35 = vsel %vm1311_vm12, %v602_v31, %v599_v32  ;;  %v987_v13 = vpop.eup %986  ;;  %v608_v49 = vmul.f32 0.6931472, %v985_v40 }
 0x140   :  { %708 = vst [vmem:[#allocation2 + $0x28] sm:$0xff] %v692_v25  ;;  %v693_v48 = vmul.f32 %v605_v35, %v1183_v60  ;;  %v677_v42 = vsel %vm676_vm13, %v674_v6, %v671_v36  ;;  %v680_v37 = vmul.f32 0.6931472, %v987_v13 }
 0x141   :  { %716 = vst [vmem:[#allocation2 + $0x68] sm:$0xff] %v700_v63  ;;  %v701_v46 = vmul.f32 %v677_v42, %v1186_v61  ;;  %v614_v47 = vsel %vm613_vm14, %v611_v14, %v608_v49 }
 0x142   :  { %709 = vst [vmem:[#allocation2 + $0x30] sm:$0xff] %v693_v48  ;;  %v694_v52 = vmul.f32 %v614_v47, %v1191_v16  ;;  %v686_v60 = vsel %vm685_vm15, %v683_v33, %v680_v37 }
 0x143   :  { %717 = vst [vmem:[#allocation2 + $0x70] sm:$0xff] %v701_v46  ;;  %v702_v53 = vmul.f32 %v686_v60, %v1194_v18 }
 0x144   :  { %710 = vst [vmem:[#allocation2 + $0x38] sm:$0xff] %v694_v52 }
 0x145   :  { %718 = vst [vmem:[#allocation2 + $0x78] sm:$0xff] %v702_v53 }
 0x146   :  { %999 = shalt.err (!%p996_p4)
}
 0x147   :  { %s1011_s24 = smov 128   ;;  %s1012_s25 = smov 8  }
 0x148   :  { %730 = dma.vmem_to_hbm [thread:$0]  %s725_s2, 2048, %s1334_s3, [#allocation3], %s1011_s24, %s1011_s24, %s1012_s25  }
 0x149   :  { %1008 = dma.done.wait [#allocation3], 2048  }
 0x14a   :  { %1009 = vsyncadd [#allocation3], 4294965248 }
 0x14b   :  { %734 = vsyncpa [#allocation3], 1 }

</bundles_post_ra>
